<compile_context>
chip_gen: v7x
topology: tpu7x:2x2x1
jax: 0.10.0
libtpu: 0.0.40
codegen_flags: <defaults>
</compile_context>

<pallas_src>
import math

import numpy as np
import jax
import jax.numpy as jnp
from jax import lax
from jax.experimental import pallas as pl
from jax.experimental.pallas import tpu as pltpu

_SELU_ALPHA = 1.6732632423543772
_SELU_SCALE = 1.0507009873554805
_BN_EPS = 1e-5


def _selu(x):
    # Clamp the exp argument so the discarded branch never produces inf.
    return _SELU_SCALE * jnp.where(
        x > 0, x, _SELU_ALPHA * (jnp.exp(jnp.minimum(x, 0.0)) - 1.0))


def _build_tap_mask(N, H, W, K):
    """0/1 validity mask per conv tap for the flattened (n, h, w) pixel axis."""
    PB = (K - 1) // 2
    hh, ww = np.meshgrid(np.arange(H), np.arange(W), indexing="ij")
    mask = np.zeros((K * K, N * H * W), np.float32)
    for kh in range(K):
        for kw in range(K):
            dh, dw = kh - PB, kw - PB
            valid = ((hh + dh >= 0) & (hh + dh < H) &
                     (ww + dw >= 0) & (ww + dw < W)).astype(np.float32)
            mask[kh * K + kw] = np.tile(valid.reshape(-1), N)
    return mask


def make_block_kernel(N, H, W, Cin, Cout, K):
    """Fused BN -> SELU -> Conv -> BN -> SELU -> Conv kernel body (channel-major)."""
    PB = (K - 1) // 2              # PyTorch 'same': floor pad on the leading side
    PE = K - 1 - PB
    NPIX = N * H * W
    PADL = PB * (W + 1)            # max negative flat-index shift
    PADR = PE * (W + 1)            # max positive flat-index shift

    def bn_selu(xcp, gamma, beta):
        # xcp: (C, NPIX) lane-dense.  gamma/beta: (C, 1).
        # One-pass batch statistics (biased variance), train-mode BatchNorm2d.
        s = jnp.sum(xcp, axis=1, keepdims=True)
        ss = jnp.sum(xcp * xcp, axis=1, keepdims=True)
        mean = s * (1.0 / NPIX)
        var = ss * (1.0 / NPIX) - mean * mean
        scale = gamma * lax.rsqrt(var + _BN_EPS)          # (C, 1)
        shift = beta - mean * scale                       # (C, 1)
        return _selu(xcp * scale + shift)                 # lane broadcast

    def conv_same(acp, masks, apad_ref, col_ref, w_ref, bias, C):
        # acp: (C, NPIX) activation; apad_ref: (C, PADL+NPIX+PADR) lane-padded strip;
        # col_ref: (K*K*C, NPIX) im2col matrix; w_ref: (Co, K*K*C); bias: (Co, 1).
        if PADL > 0:
            apad_ref[:, :PADL] = jnp.zeros((C, PADL), jnp.float32)
        if PADR > 0:
            apad_ref[:, PADL + NPIX:] = jnp.zeros((C, PADR), jnp.float32)
        apad_ref[:, PADL:PADL + NPIX] = acp
        # Build im2col: each tap is a static lane-shifted window of the padded strip,
        # zeroed at image boundaries by the precomputed mask.
        for kh in range(K):
            for kw in range(K):
                t = kh * K + kw
                d = (kh - PB) * W + (kw - PB)
                tap = apad_ref[:, PADL + d:PADL + d + NPIX]          # (C, NPIX)
                col_ref[t * C:(t + 1) * C, :] = tap * masks[t:t + 1, :]
        # Single MXU matmul for the whole convolution.
        y = jnp.dot(w_ref[...], col_ref[...],
                    preferred_element_type=jnp.float32)              # (Co, NPIX)
        return y + bias

    def kernel(mask_ref, x_ref, g1_ref, b1_ref, w1_ref, c1b_ref,
               g2_ref, b2_ref, w2_ref, c2b_ref,
               out_ref, apad1_ref, col1_ref, apad2_ref, col2_ref):
        masks = mask_ref[...]                                        # (K*K, NPIX)
        # ---- BN(Cin) -> SELU ----
        a1 = bn_selu(x_ref[...], g1_ref[...], b1_ref[...])
        # ---- Conv2d(Cin -> Cout, same) ----
        y1 = conv_same(a1, masks, apad1_ref, col1_ref, w1_ref, c1b_ref[...], Cin)
        # ---- BN(Cout) -> SELU ----
        a2 = bn_selu(y1, g2_ref[...], b2_ref[...])
        # ---- Conv2d(Cout -> Cout, same) ----
        y2 = conv_same(a2, masks, apad2_ref, col2_ref, w2_ref, c2b_ref[...], Cout)
        out_ref[...] = y2                                            # lane-dense store

    return kernel


def basic_cnn_block_2d(x_nchw, params, K):
    """Forward pass equivalent to BasicCNNBlock2D(in_c, out_c, K) at init (train mode)."""
    g1, b1, w1_t, c1b, g2, b2, w2_t, c2b = params
    N, Cin, H, W = x_nchw.shape
    Cout = w1_t.shape[0]
    NPIX = N * H * W
    PB = (K - 1) // 2
    PE = K - 1 - PB
    PADL, PADR = PB * (W + 1), PE * (W + 1)

    # Layout glue (cheap XLA ops; in a real model keep data channel-major and pre-pack
    # the weights once outside the hot path).
    x_cp = jnp.transpose(x_nchw, (1, 0, 2, 3)).reshape(Cin, NPIX).astype(jnp.float32)
    w1_m = jnp.transpose(w1_t, (0, 2, 3, 1)).reshape(Cout, K * K * Cin)   # (Co, kh*kw*ci)
    w2_m = jnp.transpose(w2_t, (0, 2, 3, 1)).reshape(Cout, K * K * Cout)
    g1c, b1c = g1.reshape(Cin, 1), b1.reshape(Cin, 1)
    g2c, b2c = g2.reshape(Cout, 1), b2.reshape(Cout, 1)
    c1bc, c2bc = c1b.reshape(Cout, 1), c2b.reshape(Cout, 1)
    tap_mask = jnp.asarray(_build_tap_mask(N, H, W, K))

    kernel = make_block_kernel(N, H, W, Cin, Cout, K)
    vspec = pl.BlockSpec(memory_space=pltpu.MemorySpace.VMEM)

    out_cp = pl.pallas_call(
        kernel,
        out_shape=jax.ShapeDtypeStruct((Cout, NPIX), jnp.float32),
        in_specs=[vspec] * 10,
        out_specs=vspec,
        scratch_shapes=[
            pltpu.VMEM((Cin, PADL + NPIX + PADR), jnp.float32),      # padded strip, conv1
            pltpu.VMEM((K * K * Cin, NPIX), jnp.float32),            # im2col, conv1
            pltpu.VMEM((Cout, PADL + NPIX + PADR), jnp.float32),     # padded strip, conv2
            pltpu.VMEM((K * K * Cout, NPIX), jnp.float32),           # im2col, conv2
        ],
        compiler_params=pltpu.CompilerParams(vmem_limit_bytes=32 * 1024 * 1024),
    )(tap_mask, x_cp, g1c, b1c, w1_m, c1bc, g2c, b2c, w2_m, c2bc)

    return jnp.transpose(out_cp.reshape(Cout, N, H, W), (1, 0, 2, 3))   # back to NCHW


def reference_block(x_nchw, params, K):
    """Pure-JAX reference (NCHW, PyTorch semantics) for verification."""
    g1, b1, w1_t, c1b, g2, b2, w2_t, c2b = params

    def bn(x, g, b):
        mean = x.mean(axis=(0, 2, 3), keepdims=True)
        var = ((x - mean) ** 2).mean(axis=(0, 2, 3), keepdims=True)
        return ((x - mean) / jnp.sqrt(var + _BN_EPS)) * g.reshape(1, -1, 1, 1) \
            + b.reshape(1, -1, 1, 1)

    def conv(x, w, b):
        y = lax.conv_general_dilated(
            x, w, window_strides=(1, 1), padding="SAME",
            dimension_numbers=("NCHW", "OIHW", "NCHW"))
        return y + b.reshape(1, -1, 1, 1)

    a = _selu(bn(x_nchw, g1, b1))
    y = conv(a, w1_t, c1b)
    a2 = _selu(bn(y, g2, b2))
    return conv(a2, w2_t, c2b)


if __name__ == "__main__":
    N, Cin, H, W = 2, 4, 16, 16
    Cout, K = 8, 3

    key = jax.random.PRNGKey(0)
    kx, kw1, kb1, kw2, kb2 = jax.random.split(key, 5)

    x = jax.random.normal(kx, (N, Cin, H, W), jnp.float32)

    fan1 = Cin * K * K
    fan2 = Cout * K * K
    w1_t = jax.random.uniform(kw1, (Cout, Cin, K, K), jnp.float32,
                              -1.0 / math.sqrt(fan1), 1.0 / math.sqrt(fan1))
    c1b = jax.random.uniform(kb1, (Cout,), jnp.float32,
                             -1.0 / math.sqrt(fan1), 1.0 / math.sqrt(fan1))
    w2_t = jax.random.uniform(kw2, (Cout, Cout, K, K), jnp.float32,
                              -1.0 / math.sqrt(fan2), 1.0 / math.sqrt(fan2))
    c2b = jax.random.uniform(kb2, (Cout,), jnp.float32,
                             -1.0 / math.sqrt(fan2), 1.0 / math.sqrt(fan2))
    g1 = jnp.ones((Cin,), jnp.float32)
    b1 = jnp.zeros((Cin,), jnp.float32)
    g2 = jnp.ones((Cout,), jnp.float32)
    b2 = jnp.zeros((Cout,), jnp.float32)

    params = (g1, b1, w1_t, c1b, g2, b2, w2_t, c2b)

    out = jax.block_until_ready(basic_cnn_block_2d(x, params, K))
    ref = jax.block_until_ready(reference_block(x, params, K))

    assert out.shape == (N, Cout, H, W), out.shape
    assert jnp.allclose(out, ref, atol=1e-3, rtol=1e-3), \
        float(jnp.max(jnp.abs(out - ref)))

    print("KERNEL_OK")
</pallas_src>

<mosaic_0001>
module attributes {stable_mosaic.version = 11 : i64} {
  func.func @kernel(%arg0: memref<9x512xf32, #tpu.memory_space<vmem>>, %arg1: memref<4x512xf32, #tpu.memory_space<vmem>>, %arg2: memref<4x1xf32, #tpu.memory_space<vmem>>, %arg3: memref<4x1xf32, #tpu.memory_space<vmem>>, %arg4: memref<8x36xf32, #tpu.memory_space<vmem>>, %arg5: memref<8x1xf32, #tpu.memory_space<vmem>>, %arg6: memref<8x1xf32, #tpu.memory_space<vmem>>, %arg7: memref<8x1xf32, #tpu.memory_space<vmem>>, %arg8: memref<8x72xf32, #tpu.memory_space<vmem>>, %arg9: memref<8x1xf32, #tpu.memory_space<vmem>>, %arg10: memref<8x512xf32, #tpu.memory_space<vmem>>, %arg11: memref<4x546xf32, #tpu.memory_space<vmem>>, %arg12: memref<36x512xf32, #tpu.memory_space<vmem>>, %arg13: memref<8x546xf32, #tpu.memory_space<vmem>>, %arg14: memref<72x512xf32, #tpu.memory_space<vmem>>) attributes {dimension_semantics = [], scalar_prefetch = 0 : i64, scratch_operands = 4 : i64, tpu.core_type = #tpu.core_type<tc>} {
    %c0 = arith.constant 0 : index
    %c0_0 = arith.constant 0 : index
    %0 = vector.load %arg0[%c0, %c0_0] : memref<9x512xf32, #tpu.memory_space<vmem>>, vector<9x512xf32>
    %c0_1 = arith.constant 0 : index
    %c0_2 = arith.constant 0 : index
    %1 = vector.load %arg1[%c0_1, %c0_2] : memref<4x512xf32, #tpu.memory_space<vmem>>, vector<4x512xf32>
    %c0_3 = arith.constant 0 : index
    %c0_4 = arith.constant 0 : index
    %2 = vector.load %arg2[%c0_3, %c0_4] : memref<4x1xf32, #tpu.memory_space<vmem>>, vector<4x1xf32>
    %c0_5 = arith.constant 0 : index
    %c0_6 = arith.constant 0 : index
    %3 = vector.load %arg3[%c0_5, %c0_6] : memref<4x1xf32, #tpu.memory_space<vmem>>, vector<4x1xf32>
    %cst = arith.constant dense<0.000000e+00> : vector<4xf32>
    %4 = vector.multi_reduction <add>, %1, %cst [1] : vector<4x512xf32> to vector<4xf32>
    %5 = vector.shape_cast %4 : vector<4xf32> to vector<4x1xf32>
    %6 = arith.mulf %1, %1 : vector<4x512xf32>
    %cst_7 = arith.constant dense<0.000000e+00> : vector<4xf32>
    %7 = vector.multi_reduction <add>, %6, %cst_7 [1] : vector<4x512xf32> to vector<4xf32>
    %8 = vector.shape_cast %7 : vector<4xf32> to vector<4x1xf32>
    %cst_8 = arith.constant 0.001953125 : f32
    %9 = vector.broadcast %cst_8 : f32 to vector<4x1xf32>
    %10 = arith.mulf %5, %9 : vector<4x1xf32>
    %cst_9 = arith.constant 0.001953125 : f32
    %11 = vector.broadcast %cst_9 : f32 to vector<4x1xf32>
    %12 = arith.mulf %8, %11 : vector<4x1xf32>
    %13 = arith.mulf %10, %10 : vector<4x1xf32>
    %14 = arith.subf %12, %13 : vector<4x1xf32>
    %cst_10 = arith.constant 9.99999974E-6 : f32
    %15 = vector.broadcast %cst_10 : f32 to vector<4x1xf32>
    %16 = arith.addf %14, %15 : vector<4x1xf32>
    %17 = math.rsqrt %16 : vector<4x1xf32>
    %18 = arith.mulf %2, %17 : vector<4x1xf32>
    %19 = arith.mulf %10, %18 : vector<4x1xf32>
    %20 = arith.subf %3, %19 : vector<4x1xf32>
    %21 = vector.broadcast %18 : vector<4x1xf32> to vector<4x512xf32>
    %22 = arith.mulf %1, %21 : vector<4x512xf32>
    %23 = vector.broadcast %20 : vector<4x1xf32> to vector<4x512xf32>
    %24 = arith.addf %22, %23 : vector<4x512xf32>
    %cst_11 = arith.constant 0.000000e+00 : f32
    %25 = vector.broadcast %cst_11 : f32 to vector<4x512xf32>
    %26 = arith.cmpf ogt, %24, %25 : vector<4x512xf32>
    %cst_12 = arith.constant 0.000000e+00 : f32
    %27 = vector.broadcast %cst_12 : f32 to vector<4x512xf32>
    %28 = arith.minimumf %24, %27 : vector<4x512xf32>
    %29 = math.exp %28 : vector<4x512xf32>
    %cst_13 = arith.constant 1.000000e+00 : f32
    %30 = vector.broadcast %cst_13 : f32 to vector<4x512xf32>
    %31 = arith.subf %29, %30 : vector<4x512xf32>
    %cst_14 = arith.constant 1.67326319 : f32
    %32 = vector.broadcast %cst_14 : f32 to vector<4x512xf32>
    %33 = arith.mulf %32, %31 : vector<4x512xf32>
    %34 = arith.select %26, %24, %33 : vector<4x512xi1>, vector<4x512xf32>
    %cst_15 = arith.constant 1.05070102 : f32
    %35 = vector.broadcast %cst_15 : f32 to vector<4x512xf32>
    %36 = arith.mulf %35, %34 : vector<4x512xf32>
    %c0_16 = arith.constant 0 : index
    %c0_17 = arith.constant 0 : index
    %37 = vector.load %arg5[%c0_16, %c0_17] : memref<8x1xf32, #tpu.memory_space<vmem>>, vector<8x1xf32>
    %cst_18 = arith.constant 0.000000e+00 : f32
    %38 = vector.broadcast %cst_18 : f32 to vector<4x17xf32>
    %c0_19 = arith.constant 0 : index
    %c0_20 = arith.constant 0 : index
    %39 = vector.load %arg11[%c0_19, %c0_20] : memref<4x546xf32, #tpu.memory_space<vmem>>, vector<4x17xf32>
    tpu.vector_store %arg11[%c0_19, %c0_20], %38 {strides = array<i32>} : memref<4x546xf32, #tpu.memory_space<vmem>>, vector<4x17xf32>,
    %cst_21 = arith.constant 0.000000e+00 : f32
    %40 = vector.broadcast %cst_21 : f32 to vector<4x17xf32>
    %c0_22 = arith.constant 0 : index
    %c529 = arith.constant 529 : index
    %41 = vector.load %arg11[%c0_22, %c529] : memref<4x546xf32, #tpu.memory_space<vmem>>, vector<4x17xf32>
    tpu.vector_store %arg11[%c0_22, %c529], %40 {strides = array<i32>} : memref<4x546xf32, #tpu.memory_space<vmem>>, vector<4x17xf32>,
    %c0_23 = arith.constant 0 : index
    %c17 = arith.constant 17 : index
    %42 = vector.load %arg11[%c0_23, %c17] : memref<4x546xf32, #tpu.memory_space<vmem>>, vector<4x512xf32>
    tpu.vector_store %arg11[%c0_23, %c17], %36 {strides = array<i32>} : memref<4x546xf32, #tpu.memory_space<vmem>>, vector<4x512xf32>,
    %c0_24 = arith.constant 0 : index
    %c0_25 = arith.constant 0 : index
    %43 = vector.load %arg11[%c0_24, %c0_25] : memref<4x546xf32, #tpu.memory_space<vmem>>, vector<4x512xf32>
    %44 = vector.extract_strided_slice %0 {offsets = [0, 0], sizes = [1, 512], strides = [1, 1]} : vector<9x512xf32> to vector<1x512xf32>
    %45 = vector.broadcast %44 : vector<1x512xf32> to vector<4x512xf32>
    %46 = arith.mulf %43, %45 : vector<4x512xf32>
    %c0_26 = arith.constant 0 : index
    %c0_27 = arith.constant 0 : index
    %47 = vector.load %arg12[%c0_26, %c0_27] : memref<36x512xf32, #tpu.memory_space<vmem>>, vector<4x512xf32>
    tpu.vector_store %arg12[%c0_26, %c0_27], %46 {strides = array<i32>} : memref<36x512xf32, #tpu.memory_space<vmem>>, vector<4x512xf32>,
    %c0_28 = arith.constant 0 : index
    %c1 = arith.constant 1 : index
    %48 = vector.load %arg11[%c0_28, %c1] : memref<4x546xf32, #tpu.memory_space<vmem>>, vector<4x512xf32>
    %49 = vector.extract_strided_slice %0 {offsets = [1, 0], sizes = [1, 512], strides = [1, 1]} : vector<9x512xf32> to vector<1x512xf32>
    %50 = vector.broadcast %49 : vector<1x512xf32> to vector<4x512xf32>
    %51 = arith.mulf %48, %50 : vector<4x512xf32>
    %c4 = arith.constant 4 : index
    %c0_29 = arith.constant 0 : index
    %52 = vector.load %arg12[%c4, %c0_29] : memref<36x512xf32, #tpu.memory_space<vmem>>, vector<4x512xf32>
    tpu.vector_store %arg12[%c4, %c0_29], %51 {strides = array<i32>} : memref<36x512xf32, #tpu.memory_space<vmem>>, vector<4x512xf32>,
    %c0_30 = arith.constant 0 : index
    %c2 = arith.constant 2 : index
    %53 = vector.load %arg11[%c0_30, %c2] : memref<4x546xf32, #tpu.memory_space<vmem>>, vector<4x512xf32>
    %54 = vector.extract_strided_slice %0 {offsets = [2, 0], sizes = [1, 512], strides = [1, 1]} : vector<9x512xf32> to vector<1x512xf32>
    %55 = vector.broadcast %54 : vector<1x512xf32> to vector<4x512xf32>
    %56 = arith.mulf %53, %55 : vector<4x512xf32>
    %c8 = arith.constant 8 : index
    %c0_31 = arith.constant 0 : index
    %57 = vector.load %arg12[%c8, %c0_31] : memref<36x512xf32, #tpu.memory_space<vmem>>, vector<4x512xf32>
    tpu.vector_store %arg12[%c8, %c0_31], %56 {strides = array<i32>} : memref<36x512xf32, #tpu.memory_space<vmem>>, vector<4x512xf32>,
    %c0_32 = arith.constant 0 : index
    %c16 = arith.constant 16 : index
    %58 = vector.load %arg11[%c0_32, %c16] : memref<4x546xf32, #tpu.memory_space<vmem>>, vector<4x512xf32>
    %59 = vector.extract_strided_slice %0 {offsets = [3, 0], sizes = [1, 512], strides = [1, 1]} : vector<9x512xf32> to vector<1x512xf32>
    %60 = vector.broadcast %59 : vector<1x512xf32> to vector<4x512xf32>
    %61 = arith.mulf %58, %60 : vector<4x512xf32>
    %c12 = arith.constant 12 : index
    %c0_33 = arith.constant 0 : index
    %62 = vector.load %arg12[%c12, %c0_33] : memref<36x512xf32, #tpu.memory_space<vmem>>, vector<4x512xf32>
    tpu.vector_store %arg12[%c12, %c0_33], %61 {strides = array<i32>} : memref<36x512xf32, #tpu.memory_space<vmem>>, vector<4x512xf32>,
    %c0_34 = arith.constant 0 : index
    %c17_35 = arith.constant 17 : index
    %63 = vector.load %arg11[%c0_34, %c17_35] : memref<4x546xf32, #tpu.memory_space<vmem>>, vector<4x512xf32>
    %64 = vector.extract_strided_slice %0 {offsets = [4, 0], sizes = [1, 512], strides = [1, 1]} : vector<9x512xf32> to vector<1x512xf32>
    %65 = vector.broadcast %64 : vector<1x512xf32> to vector<4x512xf32>
    %66 = arith.mulf %63, %65 : vector<4x512xf32>
    %c16_36 = arith.constant 16 : index
    %c0_37 = arith.constant 0 : index
    %67 = vector.load %arg12[%c16_36, %c0_37] : memref<36x512xf32, #tpu.memory_space<vmem>>, vector<4x512xf32>
    tpu.vector_store %arg12[%c16_36, %c0_37], %66 {strides = array<i32>} : memref<36x512xf32, #tpu.memory_space<vmem>>, vector<4x512xf32>,
    %c0_38 = arith.constant 0 : index
    %c18 = arith.constant 18 : index
    %68 = vector.load %arg11[%c0_38, %c18] : memref<4x546xf32, #tpu.memory_space<vmem>>, vector<4x512xf32>
    %69 = vector.extract_strided_slice %0 {offsets = [5, 0], sizes = [1, 512], strides = [1, 1]} : vector<9x512xf32> to vector<1x512xf32>
    %70 = vector.broadcast %69 : vector<1x512xf32> to vector<4x512xf32>
    %71 = arith.mulf %68, %70 : vector<4x512xf32>
    %c20 = arith.constant 20 : index
    %c0_39 = arith.constant 0 : index
    %72 = vector.load %arg12[%c20, %c0_39] : memref<36x512xf32, #tpu.memory_space<vmem>>, vector<4x512xf32>
    tpu.vector_store %arg12[%c20, %c0_39], %71 {strides = array<i32>} : memref<36x512xf32, #tpu.memory_space<vmem>>, vector<4x512xf32>,
    %c0_40 = arith.constant 0 : index
    %c32 = arith.constant 32 : index
    %73 = vector.load %arg11[%c0_40, %c32] : memref<4x546xf32, #tpu.memory_space<vmem>>, vector<4x512xf32>
    %74 = vector.extract_strided_slice %0 {offsets = [6, 0], sizes = [1, 512], strides = [1, 1]} : vector<9x512xf32> to vector<1x512xf32>
    %75 = vector.broadcast %74 : vector<1x512xf32> to vector<4x512xf32>
    %76 = arith.mulf %73, %75 : vector<4x512xf32>
    %c24 = arith.constant 24 : index
    %c0_41 = arith.constant 0 : index
    %77 = vector.load %arg12[%c24, %c0_41] : memref<36x512xf32, #tpu.memory_space<vmem>>, vector<4x512xf32>
    tpu.vector_store %arg12[%c24, %c0_41], %76 {strides = array<i32>} : memref<36x512xf32, #tpu.memory_space<vmem>>, vector<4x512xf32>,
    %c0_42 = arith.constant 0 : index
    %c33 = arith.constant 33 : index
    %78 = vector.load %arg11[%c0_42, %c33] : memref<4x546xf32, #tpu.memory_space<vmem>>, vector<4x512xf32>
    %79 = vector.extract_strided_slice %0 {offsets = [7, 0], sizes = [1, 512], strides = [1, 1]} : vector<9x512xf32> to vector<1x512xf32>
    %80 = vector.broadcast %79 : vector<1x512xf32> to vector<4x512xf32>
    %81 = arith.mulf %78, %80 : vector<4x512xf32>
    %c28 = arith.constant 28 : index
    %c0_43 = arith.constant 0 : index
    %82 = vector.load %arg12[%c28, %c0_43] : memref<36x512xf32, #tpu.memory_space<vmem>>, vector<4x512xf32>
    tpu.vector_store %arg12[%c28, %c0_43], %81 {strides = array<i32>} : memref<36x512xf32, #tpu.memory_space<vmem>>, vector<4x512xf32>,
    %c0_44 = arith.constant 0 : index
    %c34 = arith.constant 34 : index
    %83 = vector.load %arg11[%c0_44, %c34] : memref<4x546xf32, #tpu.memory_space<vmem>>, vector<4x512xf32>
    %84 = vector.extract_strided_slice %0 {offsets = [8, 0], sizes = [1, 512], strides = [1, 1]} : vector<9x512xf32> to vector<1x512xf32>
    %85 = vector.broadcast %84 : vector<1x512xf32> to vector<4x512xf32>
    %86 = arith.mulf %83, %85 : vector<4x512xf32>
    %c32_45 = arith.constant 32 : index
    %c0_46 = arith.constant 0 : index
    %87 = vector.load %arg12[%c32_45, %c0_46] : memref<36x512xf32, #tpu.memory_space<vmem>>, vector<4x512xf32>
    tpu.vector_store %arg12[%c32_45, %c0_46], %86 {strides = array<i32>} : memref<36x512xf32, #tpu.memory_space<vmem>>, vector<4x512xf32>,
    %c0_47 = arith.constant 0 : index
    %c0_48 = arith.constant 0 : index
    %88 = vector.load %arg4[%c0_47, %c0_48] : memref<8x36xf32, #tpu.memory_space<vmem>>, vector<8x36xf32>
    %c0_49 = arith.constant 0 : index
    %c0_50 = arith.constant 0 : index
    %89 = vector.load %arg12[%c0_49, %c0_50] : memref<36x512xf32, #tpu.memory_space<vmem>>, vector<36x512xf32>
    %cst_51 = arith.constant dense<0.000000e+00> : vector<8x512xf32>
    %90 = tpu.matmul %88, %89, %cst_51 {dimension_numbers = #tpu.dot_dimension_numbers<[1], [0], [0], [1], [0, 0, 1, 1], [], []>} : vector<8x36xf32>, vector<36x512xf32>, vector<8x512xf32> -> vector<8x512xf32>
    %91 = vector.broadcast %37 : vector<8x1xf32> to vector<8x512xf32>
    %92 = arith.addf %90, %91 : vector<8x512xf32>
    %c0_52 = arith.constant 0 : index
    %c0_53 = arith.constant 0 : index
    %93 = vector.load %arg6[%c0_52, %c0_53] : memref<8x1xf32, #tpu.memory_space<vmem>>, vector<8x1xf32>
    %c0_54 = arith.constant 0 : index
    %c0_55 = arith.constant 0 : index
    %94 = vector.load %arg7[%c0_54, %c0_55] : memref<8x1xf32, #tpu.memory_space<vmem>>, vector<8x1xf32>
    %cst_56 = arith.constant dense<0.000000e+00> : vector<8xf32>
    %95 = vector.multi_reduction <add>, %92, %cst_56 [1] : vector<8x512xf32> to vector<8xf32>
    %96 = vector.shape_cast %95 : vector<8xf32> to vector<8x1xf32>
    %97 = arith.mulf %92, %92 : vector<8x512xf32>
    %cst_57 = arith.constant dense<0.000000e+00> : vector<8xf32>
    %98 = vector.multi_reduction <add>, %97, %cst_57 [1] : vector<8x512xf32> to vector<8xf32>
    %99 = vector.shape_cast %98 : vector<8xf32> to vector<8x1xf32>
    %cst_58 = arith.constant 0.001953125 : f32
    %100 = vector.broadcast %cst_58 : f32 to vector<8x1xf32>
    %101 = arith.mulf %96, %100 : vector<8x1xf32>
    %cst_59 = arith.constant 0.001953125 : f32
    %102 = vector.broadcast %cst_59 : f32 to vector<8x1xf32>
    %103 = arith.mulf %99, %102 : vector<8x1xf32>
    %104 = arith.mulf %101, %101 : vector<8x1xf32>
    %105 = arith.subf %103, %104 : vector<8x1xf32>
    %cst_60 = arith.constant 9.99999974E-6 : f32
    %106 = vector.broadcast %cst_60 : f32 to vector<8x1xf32>
    %107 = arith.addf %105, %106 : vector<8x1xf32>
    %108 = math.rsqrt %107 : vector<8x1xf32>
    %109 = arith.mulf %93, %108 : vector<8x1xf32>
    %110 = arith.mulf %101, %109 : vector<8x1xf32>
    %111 = arith.subf %94, %110 : vector<8x1xf32>
    %112 = vector.broadcast %109 : vector<8x1xf32> to vector<8x512xf32>
    %113 = arith.mulf %92, %112 : vector<8x512xf32>
    %114 = vector.broadcast %111 : vector<8x1xf32> to vector<8x512xf32>
    %115 = arith.addf %113, %114 : vector<8x512xf32>
    %cst_61 = arith.constant 0.000000e+00 : f32
    %116 = vector.broadcast %cst_61 : f32 to vector<8x512xf32>
    %117 = arith.cmpf ogt, %115, %116 : vector<8x512xf32>
    %cst_62 = arith.constant 0.000000e+00 : f32
    %118 = vector.broadcast %cst_62 : f32 to vector<8x512xf32>
    %119 = arith.minimumf %115, %118 : vector<8x512xf32>
    %120 = math.exp %119 : vector<8x512xf32>
    %cst_63 = arith.constant 1.000000e+00 : f32
    %121 = vector.broadcast %cst_63 : f32 to vector<8x512xf32>
    %122 = arith.subf %120, %121 : vector<8x512xf32>
    %cst_64 = arith.constant 1.67326319 : f32
    %123 = vector.broadcast %cst_64 : f32 to vector<8x512xf32>
    %124 = arith.mulf %123, %122 : vector<8x512xf32>
    %125 = arith.select %117, %115, %124 : vector<8x512xi1>, vector<8x512xf32>
    %cst_65 = arith.constant 1.05070102 : f32
    %126 = vector.broadcast %cst_65 : f32 to vector<8x512xf32>
    %127 = arith.mulf %126, %125 : vector<8x512xf32>
    %c0_66 = arith.constant 0 : index
    %c0_67 = arith.constant 0 : index
    %128 = vector.load %arg9[%c0_66, %c0_67] : memref<8x1xf32, #tpu.memory_space<vmem>>, vector<8x1xf32>
    %cst_68 = arith.constant 0.000000e+00 : f32
    %129 = vector.broadcast %cst_68 : f32 to vector<8x17xf32>
    %c0_69 = arith.constant 0 : index
    %c0_70 = arith.constant 0 : index
    %130 = vector.load %arg13[%c0_69, %c0_70] : memref<8x546xf32, #tpu.memory_space<vmem>>, vector<8x17xf32>
    tpu.vector_store %arg13[%c0_69, %c0_70], %129 {strides = array<i32>} : memref<8x546xf32, #tpu.memory_space<vmem>>, vector<8x17xf32>,
    %cst_71 = arith.constant 0.000000e+00 : f32
    %131 = vector.broadcast %cst_71 : f32 to vector<8x17xf32>
    %c0_72 = arith.constant 0 : index
    %c529_73 = arith.constant 529 : index
    %132 = vector.load %arg13[%c0_72, %c529_73] : memref<8x546xf32, #tpu.memory_space<vmem>>, vector<8x17xf32>
    tpu.vector_store %arg13[%c0_72, %c529_73], %131 {strides = array<i32>} : memref<8x546xf32, #tpu.memory_space<vmem>>, vector<8x17xf32>,
    %c0_74 = arith.constant 0 : index
    %c17_75 = arith.constant 17 : index
    %133 = vector.load %arg13[%c0_74, %c17_75] : memref<8x546xf32, #tpu.memory_space<vmem>>, vector<8x512xf32>
    tpu.vector_store %arg13[%c0_74, %c17_75], %127 {strides = array<i32>} : memref<8x546xf32, #tpu.memory_space<vmem>>, vector<8x512xf32>,
    %c0_76 = arith.constant 0 : index
    %c0_77 = arith.constant 0 : index
    %134 = vector.load %arg13[%c0_76, %c0_77] : memref<8x546xf32, #tpu.memory_space<vmem>>, vector<8x512xf32>
    %135 = vector.extract_strided_slice %0 {offsets = [0, 0], sizes = [1, 512], strides = [1, 1]} : vector<9x512xf32> to vector<1x512xf32>
    %136 = vector.broadcast %135 : vector<1x512xf32> to vector<8x512xf32>
    %137 = arith.mulf %134, %136 : vector<8x512xf32>
    %c0_78 = arith.constant 0 : index
    %c0_79 = arith.constant 0 : index
    %138 = vector.load %arg14[%c0_78, %c0_79] : memref<72x512xf32, #tpu.memory_space<vmem>>, vector<8x512xf32>
    tpu.vector_store %arg14[%c0_78, %c0_79], %137 {strides = array<i32>} : memref<72x512xf32, #tpu.memory_space<vmem>>, vector<8x512xf32>,
    %c0_80 = arith.constant 0 : index
    %c1_81 = arith.constant 1 : index
    %139 = vector.load %arg13[%c0_80, %c1_81] : memref<8x546xf32, #tpu.memory_space<vmem>>, vector<8x512xf32>
    %140 = vector.extract_strided_slice %0 {offsets = [1, 0], sizes = [1, 512], strides = [1, 1]} : vector<9x512xf32> to vector<1x512xf32>
    %141 = vector.broadcast %140 : vector<1x512xf32> to vector<8x512xf32>
    %142 = arith.mulf %139, %141 : vector<8x512xf32>
    %c8_82 = arith.constant 8 : index
    %c0_83 = arith.constant 0 : index
    %143 = vector.load %arg14[%c8_82, %c0_83] : memref<72x512xf32, #tpu.memory_space<vmem>>, vector<8x512xf32>
    tpu.vector_store %arg14[%c8_82, %c0_83], %142 {strides = array<i32>} : memref<72x512xf32, #tpu.memory_space<vmem>>, vector<8x512xf32>,
    %c0_84 = arith.constant 0 : index
    %c2_85 = arith.constant 2 : index
    %144 = vector.load %arg13[%c0_84, %c2_85] : memref<8x546xf32, #tpu.memory_space<vmem>>, vector<8x512xf32>
    %145 = vector.extract_strided_slice %0 {offsets = [2, 0], sizes = [1, 512], strides = [1, 1]} : vector<9x512xf32> to vector<1x512xf32>
    %146 = vector.broadcast %145 : vector<1x512xf32> to vector<8x512xf32>
    %147 = arith.mulf %144, %146 : vector<8x512xf32>
    %c16_86 = arith.constant 16 : index
    %c0_87 = arith.constant 0 : index
    %148 = vector.load %arg14[%c16_86, %c0_87] : memref<72x512xf32, #tpu.memory_space<vmem>>, vector<8x512xf32>
    tpu.vector_store %arg14[%c16_86, %c0_87], %147 {strides = array<i32>} : memref<72x512xf32, #tpu.memory_space<vmem>>, vector<8x512xf32>,
    %c0_88 = arith.constant 0 : index
    %c16_89 = arith.constant 16 : index
    %149 = vector.load %arg13[%c0_88, %c16_89] : memref<8x546xf32, #tpu.memory_space<vmem>>, vector<8x512xf32>
    %150 = vector.extract_strided_slice %0 {offsets = [3, 0], sizes = [1, 512], strides = [1, 1]} : vector<9x512xf32> to vector<1x512xf32>
    %151 = vector.broadcast %150 : vector<1x512xf32> to vector<8x512xf32>
    %152 = arith.mulf %149, %151 : vector<8x512xf32>
    %c24_90 = arith.constant 24 : index
    %c0_91 = arith.constant 0 : index
    %153 = vector.load %arg14[%c24_90, %c0_91] : memref<72x512xf32, #tpu.memory_space<vmem>>, vector<8x512xf32>
    tpu.vector_store %arg14[%c24_90, %c0_91], %152 {strides = array<i32>} : memref<72x512xf32, #tpu.memory_space<vmem>>, vector<8x512xf32>,
    %c0_92 = arith.constant 0 : index
    %c17_93 = arith.constant 17 : index
    %154 = vector.load %arg13[%c0_92, %c17_93] : memref<8x546xf32, #tpu.memory_space<vmem>>, vector<8x512xf32>
    %155 = vector.extract_strided_slice %0 {offsets = [4, 0], sizes = [1, 512], strides = [1, 1]} : vector<9x512xf32> to vector<1x512xf32>
    %156 = vector.broadcast %155 : vector<1x512xf32> to vector<8x512xf32>
    %157 = arith.mulf %154, %156 : vector<8x512xf32>
    %c32_94 = arith.constant 32 : index
    %c0_95 = arith.constant 0 : index
    %158 = vector.load %arg14[%c32_94, %c0_95] : memref<72x512xf32, #tpu.memory_space<vmem>>, vector<8x512xf32>
    tpu.vector_store %arg14[%c32_94, %c0_95], %157 {strides = array<i32>} : memref<72x512xf32, #tpu.memory_space<vmem>>, vector<8x512xf32>,
    %c0_96 = arith.constant 0 : index
    %c18_97 = arith.constant 18 : index
    %159 = vector.load %arg13[%c0_96, %c18_97] : memref<8x546xf32, #tpu.memory_space<vmem>>, vector<8x512xf32>
    %160 = vector.extract_strided_slice %0 {offsets = [5, 0], sizes = [1, 512], strides = [1, 1]} : vector<9x512xf32> to vector<1x512xf32>
    %161 = vector.broadcast %160 : vector<1x512xf32> to vector<8x512xf32>
    %162 = arith.mulf %159, %161 : vector<8x512xf32>
    %c40 = arith.constant 40 : index
    %c0_98 = arith.constant 0 : index
    %163 = vector.load %arg14[%c40, %c0_98] : memref<72x512xf32, #tpu.memory_space<vmem>>, vector<8x512xf32>
    tpu.vector_store %arg14[%c40, %c0_98], %162 {strides = array<i32>} : memref<72x512xf32, #tpu.memory_space<vmem>>, vector<8x512xf32>,
    %c0_99 = arith.constant 0 : index
    %c32_100 = arith.constant 32 : index
    %164 = vector.load %arg13[%c0_99, %c32_100] : memref<8x546xf32, #tpu.memory_space<vmem>>, vector<8x512xf32>
    %165 = vector.extract_strided_slice %0 {offsets = [6, 0], sizes = [1, 512], strides = [1, 1]} : vector<9x512xf32> to vector<1x512xf32>
    %166 = vector.broadcast %165 : vector<1x512xf32> to vector<8x512xf32>
    %167 = arith.mulf %164, %166 : vector<8x512xf32>
    %c48 = arith.constant 48 : index
    %c0_101 = arith.constant 0 : index
    %168 = vector.load %arg14[%c48, %c0_101] : memref<72x512xf32, #tpu.memory_space<vmem>>, vector<8x512xf32>
    tpu.vector_store %arg14[%c48, %c0_101], %167 {strides = array<i32>} : memref<72x512xf32, #tpu.memory_space<vmem>>, vector<8x512xf32>,
    %c0_102 = arith.constant 0 : index
    %c33_103 = arith.constant 33 : index
    %169 = vector.load %arg13[%c0_102, %c33_103] : memref<8x546xf32, #tpu.memory_space<vmem>>, vector<8x512xf32>
    %170 = vector.extract_strided_slice %0 {offsets = [7, 0], sizes = [1, 512], strides = [1, 1]} : vector<9x512xf32> to vector<1x512xf32>
    %171 = vector.broadcast %170 : vector<1x512xf32> to vector<8x512xf32>
    %172 = arith.mulf %169, %171 : vector<8x512xf32>
    %c56 = arith.constant 56 : index
    %c0_104 = arith.constant 0 : index
    %173 = vector.load %arg14[%c56, %c0_104] : memref<72x512xf32, #tpu.memory_space<vmem>>, vector<8x512xf32>
    tpu.vector_store %arg14[%c56, %c0_104], %172 {strides = array<i32>} : memref<72x512xf32, #tpu.memory_space<vmem>>, vector<8x512xf32>,
    %c0_105 = arith.constant 0 : index
    %c34_106 = arith.constant 34 : index
    %174 = vector.load %arg13[%c0_105, %c34_106] : memref<8x546xf32, #tpu.memory_space<vmem>>, vector<8x512xf32>
    %175 = vector.extract_strided_slice %0 {offsets = [8, 0], sizes = [1, 512], strides = [1, 1]} : vector<9x512xf32> to vector<1x512xf32>
    %176 = vector.broadcast %175 : vector<1x512xf32> to vector<8x512xf32>
    %177 = arith.mulf %174, %176 : vector<8x512xf32>
    %c64 = arith.constant 64 : index
    %c0_107 = arith.constant 0 : index
    %178 = vector.load %arg14[%c64, %c0_107] : memref<72x512xf32, #tpu.memory_space<vmem>>, vector<8x512xf32>
    tpu.vector_store %arg14[%c64, %c0_107], %177 {strides = array<i32>} : memref<72x512xf32, #tpu.memory_space<vmem>>, vector<8x512xf32>,
    %c0_108 = arith.constant 0 : index
    %c0_109 = arith.constant 0 : index
    %179 = vector.load %arg8[%c0_108, %c0_109] : memref<8x72xf32, #tpu.memory_space<vmem>>, vector<8x72xf32>
    %c0_110 = arith.constant 0 : index
    %c0_111 = arith.constant 0 : index
    %180 = vector.load %arg14[%c0_110, %c0_111] : memref<72x512xf32, #tpu.memory_space<vmem>>, vector<72x512xf32>
    %cst_112 = arith.constant dense<0.000000e+00> : vector<8x512xf32>
    %181 = tpu.matmul %179, %180, %cst_112 {dimension_numbers = #tpu.dot_dimension_numbers<[1], [0], [0], [1], [0, 0, 1, 1], [], []>} : vector<8x72xf32>, vector<72x512xf32>, vector<8x512xf32> -> vector<8x512xf32>
    %182 = vector.broadcast %128 : vector<8x1xf32> to vector<8x512xf32>
    %183 = arith.addf %181, %182 : vector<8x512xf32>
    %c0_113 = arith.constant 0 : index
    %c0_114 = arith.constant 0 : index
    %184 = vector.load %arg10[%c0_113, %c0_114] : memref<8x512xf32, #tpu.memory_space<vmem>>, vector<8x512xf32>
    tpu.vector_store %arg10[%c0_113, %c0_114], %183 {strides = array<i32>} : memref<8x512xf32, #tpu.memory_space<vmem>>, vector<8x512xf32>,
    return
  }
}

</mosaic_0001>

<bundles_post_ra>
// kernel: tpu_custom_call.1
= control target key start
LH: loop header
LB: loop body
LE: loop exit
PB: predicated region body
PF: predicated region fallthrough
CT: control target
= control target key end

     0   :  { %15 = vsyncpa [#allocation7], 0  ;;  %s2785_s0 = inlined_call_operand.hbm [shape: f32[9,512], index: 0, kind: input, shape index: {}]   ;;  %s2786_s1 = inlined_call_operand.vmem [shape: f32[4,512], index: 1, kind: input, shape index: {}]   ;;  %s2787_s2 = inlined_call_operand.vmem [shape: f32[4,1], index: 2, kind: input, shape index: {}]   ;;  %s2788_s3 = inlined_call_operand.vmem [shape: f32[4,1], index: 3, kind: input, shape index: {}]   ;;  %s2789_s4 = inlined_call_operand.vmem [shape: f32[8,36], index: 4, kind: input, shape index: {}]   ;;  %s2790_s5 = inlined_call_operand.vmem [shape: f32[8,1], index: 5, kind: input, shape index: {}]   ;;  %s2791_s6 = inlined_call_operand.vmem [shape: f32[8,1], index: 6, kind: input, shape index: {}]   ;;  %s2792_s7 = inlined_call_operand.vmem [shape: f32[8,1], index: 7, kind: input, shape index: {}]   ;;  %s2793_s8 = inlined_call_operand.vmem [shape: f32[8,72], index: 8, kind: input, shape index: {}]   ;;  %s2794_s9 = inlined_call_operand.vmem [shape: f32[8,1], index: 9, kind: input, shape index: {}]   ;;  %s2795_s10 = inlined_call_operand.hbm [shape: f32[8,512], index: 10, kind: output, shape index: {}]  }
   0x1   :  { %16 = vsyncpa [#allocation8], 0  ;;  %s1925_s13 = smov [#allocation6]   ;;  %s1877_s17 = scalar_lea.hbm %s2785_s0, 1024 }
   0x2   :  { %s22_s14 = sshll.u32 %s1925_s13, 4  ;;  %p1878_p0 = scmp.ne.s32.totalorder %s2785_s0, %s1877_s17  ;;  %s23_s14 = int_to_ptr.vmem [resolvable:$true] %s22_s14 }
   0x3   :  { %p1881_p1 = scmp.lt.u32.totalorder %s1877_s17, %s2785_s0 }
   0x5   :  { %p1883_p2 = pnand %p1881_p1, %p1878_p0 }
   0x7   :  { %1886 = shalt.err (!%p1883_p2)
}
   0x8   :  { %s1887_s22 = scalar_lea.vmem %s23_s14, 1024  ;;  %p1892_p4 = scmp.lt.s32.totalorder %s23_s14, %s23_s14 }
   0x9   :  { %p1888_p3 = scmp.ne.s32.totalorder %s23_s14, %s1887_s22  ;;  %p1893_p5 = scmp.lt.s32.totalorder %s1887_s22, %s1887_s22 }
   0xb   :  { %p1894_p6 = por %p1893_p5, %p1892_p4 }
   0xd   :  { %p1895_p7 = pnand %p1894_p6, %p1888_p3 }
   0xf   :  { %1898 = shalt.err (!%p1895_p7)
}
  0x10   :  { %s1926_s23 = smov 512   ;;  %s1927_s24 = smov 32  }
  0x11   :  { %28 = dma.hbm_to_vmem [thread:$0]  %s2785_s0, 1024, %s23_s14, [#allocation7], %s1926_s23, %s1926_s23, %s1927_s24  }
  0x12   :  { %1921 = dma.done.wait [#allocation7], 1024  }
  0x13   :  { %1922 = vsyncadd [#allocation7], 4294966272  ;;  %vm68_vm0 = vcmask 1043456   ;;  %v2018_v0 = vld [vmem:[%s2786_s1] sm:$0xff]  ;;  %v2023_v1 = vld [vmem:[%s2786_s1 + $0x8] sm:$0xff]  ;;  %v1928_v22 = vmov 0   ;;  %v111_v30 = vlaneseq }
  0x14   :  { %v64_v2 = vcombine.high %v2018_v0, %v2018_v0  ;;  %v65_v3 = vcombine.high %v2023_v1, %v2023_v1  ;;  %v69_v4 = vsel %vm68_vm0, %v2018_v0, 0.0  ;;  %v78_v5 = vmul.f32 %v2018_v0, %v2018_v0  ;;  %1787 = vset.pattern.permute.xlu1 %v1928_v22  ;;  %1788 = vset.pattern.permute.xlu0 %v1928_v22  ;;  %v60_v32 = vld [vmem:[%s2787_s2] sm:$0xf]  ;;  %v2051_v36 = vld [vmem:[#allocation6 + $0x8] sm:$0xff]  ;;  %v2062_v42 = vld [vmem:[#allocation6 + $0x10] sm:$0xff]  ;;  %s1929_s2 = smov 1  }
  0x15   :  { %v79_v6 = vmul.f32 %v2023_v1, %v2023_v1  ;;  %v72_v8 = vsel %vm68_vm0, %v2023_v1, 0.0  ;;  %v2043_v31 = vshrl.u32 %v111_v30, 7  ;;  %v2049_v35 = vld [vmem:[#allocation6] sm:$0xff]  ;;  %v2064_v43 = vld [vmem:[#allocation6 + $0x18] sm:$0xff]  ;;  %s1931_s13 = smov 16   ;;  %s1932_s14 = smov 18  }
  0x16   :  { %v70_v7 = vsel %vm68_vm0, %v64_v2, 0.0  ;;  %v82_v10 = vcombine.high %v78_v5, %v78_v5  ;;  %v86_v12 = vsel %vm68_vm0, %v78_v5, 0.0  ;;  %v74_v13 = vsel %vm68_vm0, %v65_v3, 0.0  ;;  %v61_v38 = vld [vmem:[%s2788_s3] sm:$0xf]  ;;  %s1930_s3 = smov 2  }
  0x17   :  { %v71_v9 = vadd.f32 %v70_v7, %v69_v4  ;;  %v83_v11 = vcombine.high %v79_v6, %v79_v6  ;;  %v89_v16 = vsel %vm68_vm0, %v79_v6, 0.0  ;;  %v217_v33 = vsub.s32 1, %v2043_v31  ;;  %s1933_s15 = smov 33   ;;  %s1934_s16 = smov 17  }
  0x18   :  { %v87_v15 = vsel %vm68_vm0, %v82_v10, 0.0  ;;  %v356_v45 = vsub.s32 3, %v2043_v31  ;;  %v287_v49 = vsub.s32 2, %v2043_v31  ;;  %v494_v56 = vsub.s32 5, %v2043_v31  ;;  %s1937_s17 = smov 34   ;;  %s1938_s18 = smov 126  }
  0x19   :  { %v73_v14 = vadd.f32 %v72_v8, %v71_v9  ;;  %v88_v17 = vadd.f32 %v87_v15, %v86_v12  ;;  %v91_v19 = vsel %vm68_vm0, %v83_v11, 0.0  ;;  %v2057_v40 = vrot.slane %v2049_v35, %v217_v33  ;;  %s1939_s19 = smov 111   ;;  %s1940_s20 = smov 110  }
  0x1a   :  { %v2060_v41 = vrot.slane %v2051_v36, %v217_v33  ;;  %v2070_v47 = vrot.slane %v2062_v42, %v217_v33  ;;  %v2073_v48 = vrot.slane %v2064_v43, %v217_v33  ;;  %v2077_v50 = vrot.slane %v2049_v35, %v356_v45  ;;  %s1941_s21 = smov 96   ;;  %s1942_s22 = smov 95  }
  0x1b   :  { %v75_v18 = vadd.f32 %v74_v13, %v73_v14  ;;  %v90_v20 = vadd.f32 %v89_v16, %v88_v17  ;;  %v2080_v51 = vrot.slane %v2051_v36, %v356_v45  ;;  %v2086_v53 = vrot.slane %v2062_v42, %v287_v49  ;;  %s1943_s23 = smov 127   ;;  %s1944_s25 = smov 112  }
  0x1c   :  { %v235_v46 = vcombine.low %v2057_v40, %v2060_v41  ;;  %v236_v52 = vcombine.low %v2070_v47, %v2073_v48  ;;  %v2089_v54 = vrot.slane %v2064_v43, %v287_v49  ;;  %v2097_v58 = vrot.slane %v2062_v42, %v356_v45  ;;  %s1945_s26 = smov 94  }
  0x1d   :  { %76 = vadd.xlane.f32.xlu0 %v75_v18  ;;  %v92_v21 = vadd.f32 %v91_v19, %v90_v20  ;;  %v374_v57 = vcombine.low %v2077_v50, %v2080_v51  ;;  %v2101_v59 = vrot.slane %v2064_v43, %v356_v45  ;;  %v2105_v60 = vrot.slane %v2062_v42, %v494_v56 }
  0x1e   :  { %v306_v55 = vcombine.low %v2086_v53, %v2089_v54  ;;  %v2108_v61 = vrot.slane %v2064_v43, %v494_v56  ;;  %v633_v62 = vsub.s32 7, %v2043_v31  ;;  %v564_v63 = vsub.s32 6, %v2043_v31 }
  0x1f   :  { %v2115_v3 = vrot.slane %v2049_v35, %v287_v49  ;;  %v2118_v4 = vrot.slane %v2051_v36, %v287_v49  ;;  %v375_v7 = vcombine.low %v2097_v58, %v2101_v59  ;;  %v2142_v12 = vrot.slane %v2049_v35, %v494_v56 }
  0x20   :  { %v513_v2 = vcombine.low %v2105_v60, %v2108_v61  ;;  %v2121_v5 = vrot.slane %v2062_v42, %v633_v62  ;;  %v2124_v6 = vrot.slane %v2064_v43, %v633_v62  ;;  %v2131_v8 = vrot.slane %v2049_v35, %v564_v63 }
  0x21   :  { %93 = vadd.xlane.f32.xlu0 %v92_v21  ;;  %v2134_v9 = vrot.slane %v2051_v36, %v564_v63  ;;  %v305_v11 = vcombine.low %v2115_v3, %v2118_v4  ;;  %v2145_v13 = vrot.slane %v2051_v36, %v494_v56  ;;  %v2154_v16 = vrot.slane %v2049_v35, %v633_v62 }
  0x22   :  { %2817 = vst [vmem:[#allocation12_spill] sm:$0xff] %v2121_v5  ;;  %2818 = vst [vmem:[#allocation13_spill] sm:$0xff] %v2131_v8  ;;  %v652_v10 = vcombine.low %v2121_v5, %v2124_v6  ;;  %v2157_v17 = vrot.slane %v2051_v36, %v633_v62  ;;  %v426_v18 = vsub.s32 4, %v2043_v31  ;;  %v2171_v22 = vrot.slane %v2062_v42, %v564_v63 }
  0x23   :  { %v582_v14 = vcombine.low %v2131_v8, %v2134_v9  ;;  %v512_v15 = vcombine.low %v2142_v12, %v2145_v13  ;;  %2819 = vst [vmem:[#allocation14_spill] sm:$0xff] %v2154_v16  ;;  %vm149_vm1 = vcmask 134144   ;;  %vm161_vm2 = vcmask 138240  }
  0x24   :  { %v651_v19 = vcombine.low %v2154_v16, %v2157_v17  ;;  %v2165_v20 = vrot.slane %v2049_v35, %v426_v18  ;;  %v2168_v21 = vrot.slane %v2051_v36, %v426_v18  ;;  %2820 = vst [vmem:[#allocation15_spill] sm:$0xff] %v2171_v22  ;;  %vm151_vm3 = vcmask 273544  }
  0x25   :  { %vm168_vm6 = vcmask 1043592   ;;  %vm169_vm7 = vcmask 1047556   ;;  %vm313_vm9 = vcmask 15360   ;;  %vm520_vm10 = vcmask 146432  }
  0x26   :  { %vm170_vm8 = vmor %vm169_vm7, %vm168_vm6  ;;  %vm659_vm11 = vcmask 269312   ;;  %vm243_vm12 = vcmask 7168   ;;  %vm382_vm13 = vcmask 130048   ;;  %vm590_vm14 = vcmask 261120  }
  0x27   :  { %vm729_vm15 = vcmask 277504   ;;  %vm2816_vm6 = vcmask 908288   ;;  %vm2815_vm7 = vcmask 785408  }
  0x37   :  { %309 = vrot.lane.b32.xlu0 %v306_v55, %s1930_s3 }
  0x3b   :  { %516 = vrot.lane.b32.xlu0 %v513_v2, %s1932_s14 }
  0x3f   :  { %655 = vrot.lane.b32.xlu0 %v652_v10, %s1933_s15 }
  0x43   :  { %584 = vrot.lane.b32.xlu0 %v582_v14, %s1927_s24 }
  0xaa   :  { %v77_v23 = vpop.xlane.xlu0 %76 }
  0xab   :  { %v95_v24 = vmul.f32 0.001953125, %v77_v23  ;;  %v2174_v23 = vrot.slane %v2064_v43, %v564_v63 }
  0xad   :  { %v97_v26 = vmul.f32 %v95_v24, %v95_v24 }
  0xae   :  { %v94_v25 = vpop.xlane.xlu0 %93 }
  0xaf   :  { %v96_v27 = vmul.f32 0.001953125, %v94_v25  ;;  %v2180_v25 = vrot.slane %v2064_v43, %v426_v18 }
  0xb1   :  { %v98_v28 = vsub.f32 %v96_v27, %v97_v26  ;;  %v444_v26 = vcombine.low %v2165_v20, %v2168_v21  ;;  %v2796_v27 = vmov 0.0  }
  0xb2   :  { %150 = vst.msk [vmem:[#allocation2] sm:$0xf] %vm149_vm1, %v2796_v27  ;;  %873 = vmatprep.mubr.f32.mxu0 %v2796_v27  ;;  %944 = vmatprep.mubr.f32.mxu1 %v2796_v27 }
  0xb3   :  { %v99_v29 = vadd.f32 1e-05, %v98_v28  ;;  %1027 = vst.msk [vmem:[#allocation4] sm:$0xff] %vm161_vm2, %v2796_v27  ;;  %v1936_v28 = vmov 839922192  }
  0xb4   :  { %152 = vst.msk [vmem:[#allocation2 + $0x10] sm:$0xf] %vm151_vm3, %v2796_v27  ;;  %vm408_vm3 = vcmask 916480  }
  0xb5   :  { %1861 = vrsqrt.f32 %v99_v29  ;;  %v109_v29 = vunpack.c.l.s4 %v1936_v28  ;;  %v2206_v28 = vld [vmem:[#allocation6 + $0x20] ss:$0 sm:$0xff] }
  0xb6   :  { %2822 = vst [vmem:[#allocation17_spill] sm:$0xff] %v2206_v28 }
  0xb7   :  { %v110_v30 = vunpack.c.0.s8 %v109_v29  ;;  %v2208_v29 = vld [vmem:[#allocation6 + $0x28] ss:$0 sm:$0xff] }
  0xbf   :  { %v1862_v34 = vpop.eup %1861 }
  0xc0   :  { %v101_v37 = vmul.f32 %v1862_v34, %v60_v32  ;;  %v113_v32 = vsub.s32 %v110_v30, %v2043_v31 }
  0xc2   :  { %106 = vperm.xlu1 %1787, %v101_v37   ;;  %v102_v39 = vmul.f32 %v101_v37, %v95_v24  ;;  %v2177_v24 = vrot.slane %v2062_v42, %v426_v18 }
  0xc4   :  { %v103_v44 = vsub.f32 %v61_v38, %v102_v39  ;;  %v445_v18 = vcombine.low %v2177_v24, %v2180_v25 }
  0xc6   :  { %120 = vperm.xlu1 %1787, %v103_v44  }
  0xca   :  { %237 = vrot.lane.b32.xlu1 %v235_v46, %s1929_s2 }
  0xce   :  { %239 = vrot.lane.b32.xlu1 %v236_v52, %s1929_s2 }
  0xd2   :  { %376 = vrot.lane.b32.xlu1 %v374_v57, %s1931_s13 }
  0xd6   :  { %378 = vrot.lane.b32.xlu1 %v375_v7, %s1931_s13 }
  0xda   :  { %307 = vrot.lane.b32.xlu1 %v305_v11, %s1930_s3 }
  0xde   :  { %514 = vrot.lane.b32.xlu1 %v512_v15, %s1932_s14  ;;  %v583_v15 = vcombine.low %v2171_v22, %v2174_v23 }
  0xe2   :  { %653 = vrot.lane.b32.xlu1 %v651_v19, %s1933_s15  ;;  %v2202_v19 = vld [vmem:[#allocation6 + $0x30] ss:$0 sm:$0xff] }
  0xe3   :  { %2821 = vst [vmem:[#allocation16_spill] sm:$0xff] %v2202_v19 }
  0xe6   :  { %446 = vrot.lane.b32.xlu1 %v444_v26, %s1934_s16  ;;  %v2204_v26 = vld [vmem:[#allocation6 + $0x38] ss:$0 sm:$0xff] }
  0xe7   :  { %v722_v30 = vcombine.low %v2202_v19, %v2204_v26 }
 0x141   :  { %v107_v33 = vpop.permute.xlu1 %106 }
 0x142   :  { %v114_v34 = vrot.slane %v107_v33, %v113_v32 }
 0x144   :  { %v116_v38 = vmul.f32 %v114_v34, %v2018_v0  ;;  %v117_v39 = vmul.f32 %v114_v34, %v2023_v1 }
 0x145   :  { %v121_v37 = vpop.permute.xlu1 %120 }
 0x146   :  { %v128_v44 = vrot.slane %v121_v37, %v113_v32  ;;  %v721_v32 = vcombine.low %v2206_v28, %v2208_v29 }
 0x148   :  { %v130_v45 = vadd.f32 %v128_v44, %v116_v38  ;;  %v131_v46 = vadd.f32 %v128_v44, %v117_v39  ;;  %v2226_v39 = vpop.permute.xlu0 %309 }
 0x149   :  { %v2218_v33 = vpop.permute.xlu1 %237  ;;  %v2827_v19 = vrot.slane %v2226_v39, 4 }
 0x14a   :  { %v134_v49 = vmin.f32 %v130_v45, 0.0  ;;  %v135_v52 = vmin.f32 %v131_v46, 0.0  ;;  %vm132_vm4 = vcmp.gt.f32.partialorder %v130_v45, 0.0  ;;  %vm133_vm5 = vcmp.gt.f32.partialorder %v131_v46, 0.0 }
 0x14c   :  { %v136_v55 = vmul.f32 1.442695, %v134_v49  ;;  %v138_v56 = vmul.f32 1.442695, %v135_v52 }
 0x14d   :  { %v2220_v34 = vpop.permute.xlu1 %239 }
 0x14e   :  { %1863 = vpow2.f32 %v136_v55  ;;  %v178_v55 = vsub.s32 0, %v2043_v31 }
 0x14f   :  { %1865 = vpow2.f32 %v138_v56 }
 0x151   :  { %v2222_v37 = vpop.permute.xlu1 %376 }
 0x155   :  { %v2224_v38 = vpop.permute.xlu1 %378 }
 0x156   :  { %v381_v22 = vrot.slane %v2224_v38, 4 }
 0x158   :  { %v1864_v57 = vpop.eup %1863 }
 0x159   :  { %v1866_v62 = vpop.eup %1865  ;;  %v1699_v63 = vadd.f32 -1.0, %v1864_v57  ;;  %v2228_v44 = vpop.permute.xlu1 %307 }
 0x15a   :  { %v1700_v2 = vadd.f32 -1.0, %v1866_v62  ;;  %v2244_v62 = vrot.slane %v2062_v42, %v178_v55  ;;  %v2828_v28 = vrot.slane %v2228_v44, 4 }
 0x15b   :  { %v142_v7 = vmul.f32 1.6732632, %v1699_v63  ;;  %v2247_v63 = vrot.slane %v2064_v43, %v178_v55 }
 0x15c   :  { %v143_v0 = vmul.f32 1.6732632, %v1700_v2  ;;  %2823 = vst [vmem:[#allocation18_spill] sm:$0xff] %v2244_v62  ;;  %v315_v5 = vsel %vm68_vm0, %v2828_v28, %v2827_v19 }
 0x15d   :  { %v144_v1 = vsel %vm132_vm4, %v130_v45, %v142_v7  ;;  %v2230_v45 = vpop.permute.xlu0 %516  ;;  %2824 = vst [vmem:[#allocation19_spill] sm:$0xff] %v2247_v63  ;;  %v197_v31 = vcombine.low %v2244_v62, %v2247_v63  ;;  %vm2812_vm4 = vcmask 900096  }
 0x15e   :  { %v146_v10 = vmul.f32 1.050701, %v144_v1  ;;  %v145_v11 = vsel %vm133_vm5, %v131_v46, %v143_v0  ;;  %v2232_v46 = vpop.permute.xlu1 %514  ;;  %v519_v8 = vrot.slane %v2230_v45, 4  ;;  %vm338_vm5 = vcmask 1031168  }
 0x15f   :  { %v147_v14 = vmul.f32 1.050701, %v145_v11 }
 0x160   :  { %155 = vrot.lane.b32.xlu0 %v146_v10, %s1934_s16 }
 0x161   :  { %157 = vrot.lane.b32.xlu1 %v147_v14, %s1934_s16  ;;  %v2234_v49 = vpop.permute.xlu0 %655  ;;  %v2798_v14 = vrot.slane %v2228_v44, 4 }
 0x162   :  { %v2236_v52 = vpop.permute.xlu1 %653 }
 0x164   :  { %586 = vrot.lane.b32.xlu0 %v583_v15, %s1927_s24  ;;  %v2800_v15 = vrot.slane %v2226_v39, 4 }
 0x165   :  { %448 = vrot.lane.b32.xlu1 %v445_v18, %s1934_s16  ;;  %v2241_v57 = vpop.permute.xlu0 %584  ;;  %v2261_v18 = vrot.slane %v2051_v36, %v178_v55 }
 0x166   :  { %v2239_v56 = vpop.permute.xlu1 %446 }
 0x167   :  { %2825 = vst [vmem:[#allocation20_spill] sm:$0xff] %v2261_v18 }
 0x168   :  { %725 = vrot.lane.b32.xlu0 %v722_v30, %s1937_s17  ;;  %v314_v30 = vsel %vm313_vm9, %v2798_v14, %v2228_v44 }
 0x169   :  { %723 = vrot.lane.b32.xlu1 %v721_v32, %s1937_s17 }
 0x1d2   :  { %v156_v2 = vpop.permute.xlu0 %155 }
 0x1d3   :  { %v159_v7 = vrot.slane %v156_v2, 4  ;;  %v158_v0 = vpop.permute.xlu1 %157 }
 0x1d4   :  { %v160_v1 = vrot.slane %v158_v0, 4 }
 0x1d5   :  { %v162_v10 = vsel %vm161_vm2, %v159_v7, %v156_v2 }
 0x1d6   :  { %171 = vst.msk [vmem:[#allocation2] sm:$0xff] %vm170_vm8, %v162_v10  ;;  %v163_v11 = vsel %vm68_vm0, %v159_v7, %v160_v1  ;;  %vm2813_vm8 = vcmask 777216  }
 0x1d7   :  { %173 = vst.msk [vmem:[#allocation2 + $0x10] sm:$0xf] %vm149_vm1, %v160_v1  ;;  %v2255_v42 = vsel %vm161_vm2, %v163_v11, %v158_v0  ;;  %v2267_v32 = vpop.permute.xlu1 %448  ;;  %v2272_v1 = vrot.slane %v2049_v35, %v178_v55  ;;  %v2288_v55 = vpop.permute.xlu0 %586  ;;  %vm269_vm1 = vcmask 1039360  }
 0x1d8   :  { %v201_v43 = vmul.f32 %v197_v31, %v2255_v42  ;;  %v2799_v31 = vrot.slane %v2232_v46, 4  ;;  %v451_v27 = vrot.slane %v2267_v32, 4  ;;  %v589_v14 = vrot.slane %v2288_v55, 4 }
 0x1d9   :  { %2826 = vst [vmem:[#allocation21_spill] sm:$0xff] %v2272_v1 }
 0x1da   :  { %210 = vst [vmem:[#allocation3 + $0x10] sm:$0xf] %v201_v43  ;;  %v205_v0 = vcombine.high %v201_v43, %v201_v43  ;;  %v521_v35 = vsel %vm520_vm10, %v2799_v31, %v2232_v46  ;;  %v450_v31 = vrot.slane %v2239_v56, 4 }
 0x1dc   :  { %211 = vst [vmem:[#allocation3 + $0x18] sm:$0xf] %v205_v0  ;;  %v2803_v0 = vrot.slane %v2236_v52, 4  ;;  %v453_v44 = vsel %vm68_vm0, %v450_v31, %v451_v27 }
 0x1dd   :  { %v2269_v2 = vld [vmem:[#allocation2] sm:$0xff] }
 0x1de   :  { %v284_v7 = vld [vmem:[#allocation2 + $0x10] sm:$0xf]  ;;  %v2277_v36 = vmul.f32 %v2269_v2, %v314_v30  ;;  %v2291_v30 = vmul.f32 %v2269_v2, %v521_v35  ;;  %v660_v35 = vsel %vm659_vm11, %v2803_v0, %v2236_v52 }
 0x1df   :  { %v322_v10 = vmul.f32 %v2800_v15, %v284_v7  ;;  %v423_v11 = vld [vmem:[#allocation2 + $0x10] sm:$0xf]  ;;  %v196_v7 = vcombine.low %v2272_v1, %v2261_v18  ;;  %v2307_v18 = vmul.f32 %v2269_v2, %v660_v35  ;;  %v380_v1 = vrot.slane %v2222_v37, 4 }
 0x1e0   :  { %328 = vrot.lane.b32.xlu0 %v2277_v36, %s1938_s18  ;;  %v460_v43 = vmul.f32 %v451_v27, %v423_v11  ;;  %v241_v11 = vrot.slane %v2218_v33, 4  ;;  %v452_v35 = vsel %vm161_vm2, %v450_v31, %v2239_v56  ;;  %v214_v63 = vld [vmem:[#allocation2 + $0x10] sm:$0xf]  ;;  %v2829_v31 = vrot.slane %v2232_v46, 4 }
 0x1e1   :  { %336 = vrot.lane.b32.xlu1 %v322_v10, %s1938_s18  ;;  %v561_v10 = vld [vmem:[#allocation2 + $0x10] sm:$0xf]  ;;  %v384_v28 = vsel %vm68_vm0, %v380_v1, %v381_v22  ;;  %v2830_v46 = vrot.slane %v2236_v52, 4 }
 0x1e2   :  { %v599_v15 = vmul.f32 %v589_v14, %v561_v10  ;;  %v244_v0 = vsel %vm243_vm12, %v241_v11, %v2218_v33  ;;  %v588_v10 = vrot.slane %v2241_v57, 4  ;;  %v383_v33 = vsel %vm382_vm13, %v380_v1, %v2222_v37  ;;  %v353_v16 = vld [vmem:[#allocation2 + $0x10] sm:$0xf] }
 0x1e3   :  { %v316_v37 = vsel %vm313_vm9, %v315_v5, %v2226_v39  ;;  %v385_v27 = vsel %vm382_vm13, %v384_v28, %v2224_v38 }
 0x1e4   :  { %538 = vrot.lane.b32.xlu0 %v2291_v30, %s1940_s20  ;;  %v591_v56 = vsel %vm590_vm14, %v588_v10, %v2241_v57  ;;  %v390_v1 = vmul.f32 %v385_v27, %v2255_v42  ;;  %v630_v27 = vld [vmem:[#allocation2 + $0x10] sm:$0xf] }
 0x1e5   :  { %474 = vrot.lane.b32.xlu1 %v460_v43, %s1939_s19  ;;  %v200_v43 = vmul.f32 %v2269_v2, %v196_v7  ;;  %v458_v7 = vmul.f32 %v2269_v2, %v452_v35  ;;  %v597_v35 = vmul.f32 %v2269_v2, %v591_v56  ;;  %v391_v56 = vmul.f32 %v381_v22, %v353_v16 }
 0x1e6   :  { %v592_v16 = vsel %vm68_vm0, %v588_v10, %v589_v14 }
 0x1e7   :  { %v204_v62 = vcombine.high %v200_v43, %v200_v43  ;;  %208 = vst [vmem:[#allocation3] sm:$0xf] %v200_v43  ;;  %v242_v43 = vrot.slane %v2220_v34, 4  ;;  %v397_v5 = vcombine.low %v391_v56, %v391_v56  ;;  %v593_v14 = vsel %vm590_vm14, %v592_v16, %v2288_v55 }
 0x1e8   :  { %677 = vrot.lane.b32.xlu0 %v2307_v18, %s1942_s22  ;;  %v598_v10 = vmul.f32 %v593_v14, %v2255_v42 }
 0x1e9   :  { %613 = vrot.lane.b32.xlu1 %v599_v15, %s1941_s21  ;;  %v2320_v15 = vmul.f32 %v2269_v2, %v244_v0  ;;  %209 = vst [vmem:[#allocation3 + $0x8] sm:$0xf] %v204_v62  ;;  %v389_v0 = vmul.f32 %v2269_v2, %v383_v33  ;;  %v252_v62 = vmul.f32 %v242_v43, %v214_v63 }
 0x1ea   :  { %v245_v57 = vsel %vm68_vm0, %v241_v11, %v242_v43  ;;  %v321_v33 = vmul.f32 %v316_v37, %v2255_v42  ;;  %v454_v11 = vsel %vm161_vm2, %v453_v44, %v2267_v32  ;;  %v522_v43 = vsel %vm68_vm0, %v2829_v31, %v519_v8  ;;  %v491_v32 = vld [vmem:[#allocation2 + $0x10] sm:$0xf] }
 0x1eb   :  { %v258_v63 = vcombine.low %v252_v62, %v252_v62  ;;  %v246_v19 = vsel %vm243_vm12, %v245_v57, %v2220_v34  ;;  %v658_v34 = vrot.slane %v2234_v49, 4  ;;  %v459_v22 = vmul.f32 %v454_v11, %v2255_v42  ;;  %v726_v11 = vpop.permute.xlu0 %725 }
 0x1ec   :  { %466 = vrot.lane.b32.xlu0 %v458_v7, %s1939_s19  ;;  %v251_v39 = vmul.f32 %v246_v19, %v2255_v42  ;;  %v523_v38 = vsel %vm520_vm10, %v522_v43, %v2230_v45  ;;  %v529_v37 = vmul.f32 %v519_v8, %v491_v32  ;;  %v326_v8 = vcombine.high %v2277_v36, %v2277_v36 }
 0x1ed   :  { %261 = vrot.lane.b32.xlu1 %v2320_v15, %s1943_s23  ;;  %v528_v62 = vmul.f32 %v523_v38, %v2255_v42  ;;  %v661_v57 = vsel %vm68_vm0, %v2830_v46, %v658_v34  ;;  %v464_v45 = vcombine.high %v458_v7, %v458_v7  ;;  %v256_v52 = vcombine.low %v2320_v15, %v2320_v15 }
 0x1ee   :  { %v662_v55 = vsel %vm659_vm11, %v661_v57, %v2234_v49  ;;  %v603_v44 = vcombine.high %v597_v35, %v597_v35  ;;  %v724_v49 = vpop.permute.xlu1 %723  ;;  %v395_v19 = vcombine.low %v389_v0, %v389_v0  ;;  %v257_v28 = vcombine.low %v251_v39, %v251_v39 }
 0x1ef   :  { %v667_v56 = vmul.f32 %v662_v55, %v2255_v42  ;;  %v533_v36 = vcombine.low %v2291_v30, %v2291_v30  ;;  %v396_v7 = vcombine.low %v390_v1, %v390_v1  ;;  %v534_v16 = vcombine.low %v528_v62, %v528_v62 }
 0x1f0   :  { %605 = vrot.lane.b32.xlu0 %v597_v35, %s1941_s21  ;;  %v668_v43 = vmul.f32 %v658_v34, %v630_v27  ;;  %v604_v14 = vcombine.high %v598_v10, %v598_v10 }
 0x1f1   :  { %400 = vrot.lane.b32.xlu1 %v389_v0, %s1944_s25  ;;  %v672_v0 = vcombine.low %v2307_v18, %v2307_v18  ;;  %v673_v31 = vcombine.low %v667_v56, %v667_v56 }
 0x1f4   :  { %332 = vrot.lane.b32.xlu0 %v321_v33, %s1938_s18 }
 0x1f5   :  { %267 = vrot.lane.b32.xlu1 %v258_v63, %s1943_s23  ;;  %v535_v63 = vcombine.low %v529_v37, %v529_v37 }
 0x1f8   :  { %265 = vrot.lane.b32.xlu0 %v251_v39, %s1943_s23  ;;  %v327_v39 = vcombine.high %v321_v33, %v321_v33  ;;  %v674_v33 = vcombine.low %v668_v43, %v668_v43 }
 0x1f9   :  { %406 = vrot.lane.b32.xlu1 %v397_v5, %s1944_s25  ;;  %v727_v5 = vrot.slane %v724_v49, 4 }
 0x1fb   :  { %v730_v15 = vsel %vm729_vm15, %v727_v5, %v724_v49 }
 0x1fc   :  { %404 = vrot.lane.b32.xlu0 %v390_v1, %s1944_s25  ;;  %v736_v35 = vmul.f32 %v730_v15, %v2269_v2  ;;  %v728_v1 = vrot.slane %v726_v11, 4  ;;  %v465_v2 = vcombine.high %v459_v22, %v459_v22 }
 0x1fd   :  { %470 = vrot.lane.b32.xlu1 %v459_v22, %s1939_s19 }
 0x1fe   :  { %v742_v30 = vcombine.high %v736_v35, %v736_v35  ;;  %v731_v18 = vsel %vm68_vm0, %v727_v5, %v728_v1 }
 0x1ff   :  { %v732_v32 = vsel %vm729_vm15, %v731_v18, %v726_v11 }
 0x200   :  { %542 = vrot.lane.b32.xlu0 %v528_v62, %s1940_s20  ;;  %v737_v38 = vmul.f32 %v732_v32, %v2255_v42  ;;  %v700_v62 = vld [vmem:[#allocation2 + $0x10] sm:$0xf] }
 0x201   :  { %609 = vrot.lane.b32.xlu1 %v598_v10, %s1941_s21  ;;  %v738_v22 = vmul.f32 %v728_v1, %v700_v62  ;;  %v148_v10 = vld [vmem:[%s2790_s5] sm:$0xff] }
 0x202   :  { %v743_v34 = vcombine.high %v737_v38, %v737_v38 }
 0x204   :  { %681 = vrot.lane.b32.xlu0 %v667_v56, %s1942_s22 }
 0x205   :  { %544 = vrot.lane.b32.xlu1 %v535_v63, %s1940_s20 }
 0x208   :  { %468 = vrot.lane.b32.xlu0 %v464_v45, %s1939_s19 }
 0x209   :  { %330 = vrot.lane.b32.xlu1 %v326_v8, %s1938_s18 }
 0x20c   :  { %607 = vrot.lane.b32.xlu0 %v603_v44, %s1941_s21 }
 0x20d   :  { %259 = vrot.lane.b32.xlu1 %v256_v52, %s1943_s23 }
 0x210   :  { %263 = vrot.lane.b32.xlu0 %v257_v28, %s1943_s23 }
 0x211   :  { %398 = vrot.lane.b32.xlu1 %v395_v19, %s1944_s25 }
 0x214   :  { %402 = vrot.lane.b32.xlu0 %v396_v7, %s1944_s25 }
 0x215   :  { %536 = vrot.lane.b32.xlu1 %v533_v36, %s1940_s20 }
 0x218   :  { %334 = vrot.lane.b32.xlu0 %v327_v39, %s1938_s18 }
 0x219   :  { %675 = vrot.lane.b32.xlu1 %v672_v0, %s1942_s22 }
 0x21c   :  { %746 = vrot.lane.b32.xlu0 %v742_v30, %s1945_s26 }
 0x21d   :  { %540 = vrot.lane.b32.xlu1 %v534_v16, %s1940_s20 }
 0x220   :  { %472 = vrot.lane.b32.xlu0 %v465_v2, %s1939_s19 }
 0x221   :  { %679 = vrot.lane.b32.xlu1 %v673_v31, %s1942_s22 }
 0x224   :  { %611 = vrot.lane.b32.xlu0 %v604_v14, %s1941_s21 }
 0x225   :  { %683 = vrot.lane.b32.xlu1 %v674_v33, %s1942_s22 }
 0x228   :  { %744 = vrot.lane.b32.xlu0 %v736_v35, %s1945_s26 }
 0x229   :  { %748 = vrot.lane.b32.xlu1 %v737_v38, %s1945_s26 }
 0x22c   :  { %752 = vrot.lane.b32.xlu0 %v738_v22, %s1945_s26 }
 0x22d   :  { %750 = vrot.lane.b32.xlu1 %v743_v34, %s1945_s26 }
 0x231   :  { %790 = vperm.xlu1 %1787, %v148_v10  }
 0x252   :  { %v329_v46 = vpop.permute.xlu0 %328 }
 0x253   :  { %v2420_v37 = vpop.permute.xlu1 %336 }
 0x256   :  { %v2424_v57 = vpop.permute.xlu0 %538 }
 0x257   :  { %v2422_v42 = vpop.permute.xlu1 %474 }
 0x25a   :  { %v2428_v63 = vpop.permute.xlu0 %677 }
 0x25b   :  { %v2426_v55 = vpop.permute.xlu1 %613 }
 0x25e   :  { %v467_v8 = vpop.permute.xlu0 %466 }
 0x25f   :  { %v262_v56 = vpop.permute.xlu1 %261 }
 0x262   :  { %v606_v52 = vpop.permute.xlu0 %605 }
 0x263   :  { %v401_v45 = vpop.permute.xlu1 %400 }
 0x266   :  { %v333_v49 = vpop.permute.xlu0 %332 }
 0x267   :  { %v268_v44 = vpop.permute.xlu1 %267 }
 0x26a   :  { %v266_v28 = vpop.permute.xlu0 %265 }
 0x26b   :  { %v407_v19 = vpop.permute.xlu1 %406  ;;  %v273_v5 = vsel %vm269_vm1, %v266_v28, %v268_v44 }
 0x26c   :  { %281 = vst [vmem:[#allocation3 + $0x18] sm:$0xf0] %v273_v5 }
 0x26e   :  { %v405_v7 = vpop.permute.xlu0 %404 }
 0x26f   :  { %v2431_v36 = vpop.permute.xlu1 %470  ;;  %v412_v15 = vsel %vm408_vm3, %v405_v7, %v407_v19 }
 0x270   :  { %420 = vst [vmem:[#allocation3 + $0x38] sm:$0xf0] %v412_v15 }
 0x272   :  { %v543_v0 = vpop.permute.xlu0 %542 }
 0x273   :  { %v2434_v35 = vpop.permute.xlu1 %609 }
 0x276   :  { %v2436_v11 = vpop.permute.xlu0 %681 }
 0x277   :  { %v545_v39 = vpop.permute.xlu1 %544 }
 0x278   :  { %v550_v16 = vsel %vm2812_vm4, %v543_v0, %v545_v39 }
 0x279   :  { %558 = vst [vmem:[#allocation3 + $0x58] sm:$0xf0] %v550_v16 }
 0x27a   :  { %v469_v27 = vpop.permute.xlu0 %468 }
 0x27b   :  { %v331_v30 = vpop.permute.xlu1 %330  ;;  %v477_v2 = vsel %vm2816_vm6, %v467_v8, %v469_v27  ;;  %v478_v43 = vsel %vm2816_vm6, %v469_v27, %v2431_v36 }
 0x27c   :  { %v339_v1 = vsel %vm338_vm5, %v329_v46, %v331_v30  ;;  %v340_v31 = vsel %vm338_vm5, %v331_v30, %v333_v49  ;;  %485 = vst [vmem:[#allocation3 + $0x40] sm:$0xf] %v477_v2  ;;  %486 = vst [vmem:[#allocation3 + $0x48] sm:$0xf] %v478_v43 }
 0x27d   :  { %347 = vst [vmem:[#allocation3 + $0x20] sm:$0xf] %v339_v1  ;;  %348 = vst [vmem:[#allocation3 + $0x28] sm:$0xf] %v340_v31 }
 0x27e   :  { %v608_v33 = vpop.permute.xlu0 %607 }
 0x27f   :  { %v260_v18 = vpop.permute.xlu1 %259  ;;  %v616_v32 = vsel %vm2815_vm7, %v606_v52, %v608_v33  ;;  %v617_v38 = vsel %vm2815_vm7, %v608_v33, %v2434_v35 }
 0x280   :  { %v270_v14 = vsel %vm269_vm1, %v260_v18, %v262_v56  ;;  %624 = vst [vmem:[#allocation3 + $0x60] sm:$0xf] %v616_v32  ;;  %625 = vst [vmem:[#allocation3 + $0x68] sm:$0xf] %v617_v38 }
 0x281   :  { %278 = vst [vmem:[#allocation3] sm:$0xf0] %v270_v14  ;;  %v771_v14 = vld [vmem:[#allocation3 + $0x18] sm:$0xff] }
 0x282   :  { %v264_v34 = vpop.permute.xlu0 %263 }
 0x283   :  { %v399_v62 = vpop.permute.xlu1 %398  ;;  %v271_v10 = vsel %vm269_vm1, %v262_v56, %v264_v34  ;;  %v272_v46 = vsel %vm269_vm1, %v264_v34, %v266_v28 }
 0x284   :  { %v409_v22 = vsel %vm408_vm3, %v399_v62, %v401_v45  ;;  %279 = vst [vmem:[#allocation3 + $0x8] sm:$0xf0] %v271_v10  ;;  %280 = vst [vmem:[#allocation3 + $0x10] sm:$0xf0] %v272_v46 }
 0x285   :  { %417 = vst [vmem:[#allocation3 + $0x20] sm:$0xf0] %v409_v22 }
 0x286   :  { %v403_v44 = vpop.permute.xlu0 %402 }
 0x287   :  { %v537_v8 = vpop.permute.xlu1 %536  ;;  %v410_v19 = vsel %vm408_vm3, %v401_v45, %v403_v44  ;;  %v411_v5 = vsel %vm408_vm3, %v403_v44, %v405_v7 }
 0x288   :  { %v547_v52 = vsel %vm2812_vm4, %v537_v8, %v2424_v57  ;;  %418 = vst [vmem:[#allocation3 + $0x28] sm:$0xf0] %v410_v19  ;;  %419 = vst [vmem:[#allocation3 + $0x30] sm:$0xf0] %v411_v5 }
 0x289   :  { %555 = vst [vmem:[#allocation3 + $0x40] sm:$0xf0] %v547_v52 }
 0x28a   :  { %v335_v56 = vpop.permute.xlu0 %334 }
 0x28b   :  { %v676_v15 = vpop.permute.xlu1 %675  ;;  %v341_v39 = vsel %vm338_vm5, %v333_v49, %v335_v56  ;;  %v342_v16 = vsel %vm338_vm5, %v335_v56, %v2420_v37  ;;  %v769_v31 = vld [vmem:[#allocation3 + $0x8] sm:$0xff]  ;;  %v768_v49 = vld [vmem:[#allocation3] sm:$0xff]  ;;  %v770_v34 = vld [vmem:[#allocation3 + $0x10] sm:$0xff] }
 0x28c   :  { %v686_v28 = vsel %vm2813_vm8, %v676_v15, %v2428_v63  ;;  %349 = vst [vmem:[#allocation3 + $0x30] sm:$0xf] %v341_v39  ;;  %350 = vst [vmem:[#allocation3 + $0x38] sm:$0xf] %v342_v16  ;;  %v772_v7 = vld [vmem:[#allocation3 + $0x20] sm:$0xff] }
 0x28d   :  { %694 = vst [vmem:[#allocation3 + $0x60] sm:$0xf0] %v686_v28  ;;  %v1719_v18 = vpack.c.bf16 %v772_v7, %v768_v49 }
 0x28e   :  { %v747_v30 = vpop.permute.xlu0 %746 }
 0x28f   :  { %v541_v45 = vpop.permute.xlu1 %540  ;;  %v773_v2 = vld [vmem:[#allocation3 + $0x28] sm:$0xff] }
 0x290   :  { %v548_v27 = vsel %vm2812_vm4, %v2424_v57, %v541_v45  ;;  %v549_v1 = vsel %vm2812_vm4, %v541_v45, %v543_v0  ;;  %v1717_v43 = vpack.c.bf16 %v773_v2, %v769_v31  ;;  %vm2814_vm4 = vcmask 769024   ;;  %v776_v39 = vld [vmem:[#allocation3 + $0x40] sm:$0xff] }
 0x291   :  { %556 = vst [vmem:[#allocation3 + $0x48] sm:$0xf0] %v548_v27  ;;  %557 = vst [vmem:[#allocation3 + $0x50] sm:$0xf0] %v549_v1 }
 0x292   :  { %v473_v37 = vpop.permute.xlu0 %472  ;;  %1718 = vmatprep.subr.bf16.mxu0 %v1717_v43 }
 0x293   :  { %v680_v33 = vpop.permute.xlu1 %679  ;;  %v479_v57 = vsel %vm2816_vm6, %v2431_v36, %v473_v37  ;;  %v480_v0 = vsel %vm2816_vm6, %v473_v37, %v2422_v42  ;;  %1720 = vmatpush1.bf16.msra.mxu0 %v1719_v18  ;;  %v775_v62 = vld [vmem:[#allocation3 + $0x38] sm:$0xff]  ;;  %v774_v22 = vld [vmem:[#allocation3 + $0x30] sm:$0xff] }
 0x294   :  { %v687_v32 = vsel %vm2813_vm8, %v2428_v63, %v680_v33  ;;  %v688_v38 = vsel %vm2813_vm8, %v680_v33, %v2436_v11  ;;  %487 = vst [vmem:[#allocation3 + $0x50] sm:$0xf] %v479_v57  ;;  %488 = vst [vmem:[#allocation3 + $0x58] sm:$0xf] %v480_v0  ;;  %v1725_v10 = vpack.c.bf16 %v775_v62, %v771_v14  ;;  %v780_v5 = vld [vmem:[#allocation3 + $0x60] sm:$0xff]  ;;  %v767_v37 = vld [vmem:[%s2789_s4] sm:$0xff] }
 0x295   :  { %695 = vst [vmem:[#allocation3 + $0x68] sm:$0xf0] %v687_v32  ;;  %696 = vst [vmem:[#allocation3 + $0x70] sm:$0xf0] %v688_v38  ;;  %v1727_v46 = vpack.c.bf16 %v774_v22, %v770_v34  ;;  %v1723_v16 = vpack.c.bf16 %v780_v5, %v776_v39  ;;  %v2831_v32 = vmov 0.0  }
 0x296   :  { %v612_v8 = vpop.permute.xlu0 %611  ;;  %1726 = vmatprep.subr.bf16.mxu1 %v1725_v10 }
 0x297   :  { %v684_v63 = vpop.permute.xlu1 %683  ;;  %v618_v36 = vsel %vm2815_vm7, %v2434_v35, %v612_v8  ;;  %v619_v42 = vsel %vm2815_vm7, %v612_v8, %v2426_v55  ;;  %1728 = vmatpush1.bf16.msra.mxu1 %v1727_v46 }
 0x298   :  { %v689_v44 = vsel %vm2813_vm8, %v2436_v11, %v684_v63  ;;  %626 = vst [vmem:[#allocation3 + $0x70] sm:$0xf] %v618_v36  ;;  %627 = vst [vmem:[#allocation3 + $0x78] sm:$0xf] %v619_v42  ;;  %v777_v28 = vld [vmem:[#allocation3 + $0x48] sm:$0xff]  ;;  %vm793_vm8 = vcmask 293888  }
 0x299   :  { %697 = vst [vmem:[#allocation3 + $0x78] sm:$0xf0] %v689_v44 }
 0x29a   :  { %v745_v19 = vpop.permute.xlu0 %744 }
 0x29b   :  { %v749_v52 = vpop.permute.xlu1 %748  ;;  %v755_v56 = vsel %vm2814_vm4, %v745_v19, %v747_v30  ;;  %v779_v7 = vld [vmem:[#allocation3 + $0x58] sm:$0xff]  ;;  %v778_v2 = vld [vmem:[#allocation3 + $0x50] sm:$0xff] }
 0x29c   :  { %v756_v15 = vsel %vm2814_vm4, %v747_v30, %v749_v52  ;;  %v781_v11 = vld [vmem:[#allocation3 + $0x68] sm:$0xff]  ;;  %763 = vst [vmem:[#allocation3 + $0x80] sm:$0xf] %v755_v56 }
 0x29d   :  { %764 = vst [vmem:[#allocation3 + $0x88] sm:$0xf] %v756_v15  ;;  %v1721_v35 = vpack.c.bf16 %v781_v11, %v777_v28 }
 0x29e   :  { %v753_v45 = vpop.permute.xlu0 %752 }
 0x29f   :  { %v751_v55 = vpop.permute.xlu1 %750  ;;  %1722 = vmatprep.subr.bf16.mxu0 %v1721_v35  ;;  %v782_v43 = vld [vmem:[#allocation3 + $0x70] sm:$0xff] }
 0x2a0   :  { %v757_v27 = vsel %vm2814_vm4, %v749_v52, %v751_v55  ;;  %v758_v1 = vsel %vm2814_vm4, %v751_v55, %v753_v45  ;;  %1724 = vmatpush1.bf16.msra.mxu0 %v1723_v16  ;;  %v783_v31 = vld [vmem:[#allocation3 + $0x78] sm:$0xff]  ;;  %v1731_v49 = vpack.c.bf16 %v782_v43, %v778_v2  ;;  %v952_v43 = vld [vmem:[%s2792_s7] sm:$0xff] }
 0x2a1   :  { %765 = vst [vmem:[#allocation3 + $0x90] sm:$0xf] %v757_v27  ;;  %766 = vst [vmem:[#allocation3 + $0x98] sm:$0xf] %v758_v1  ;;  %v1729_v30 = vpack.c.bf16 %v783_v31, %v779_v7  ;;  %v951_v1 = vld [vmem:[%s2791_s6] sm:$0xff] }
 0x2a3   :  { %1730 = vmatprep.subr.bf16.mxu1 %v1729_v30  ;;  %v784_v33 = vld [vmem:[#allocation3 + $0x80] sm:$0xf] }
 0x2a4   :  { %v785_v18 = vld [vmem:[#allocation3 + $0x88] sm:$0xf]  ;;  %1732 = vmatpush1.bf16.msra.mxu1 %v1731_v49 }
 0x2a5   :  { %1705 = vmatprep.subr.msk.mxu0 %vm68_vm0, %v785_v18 }
 0x2a6   :  { %1706 = vmatpush1.msk.msra.mxu0 %vm68_vm0, %v784_v33 }
 0x2a7   :  { %1707 = vmatmul.mubr.msk.f32.vlgmr.msra.gmra.mrb[0].mxu0 %vm793_vm8, %v767_v37 }
 0x2a8   :  { %v787_v14 = vld [vmem:[#allocation3 + $0x98] sm:$0xf]  ;;  %1602 = vmatprep.mubr.f32.mxu0 %v2831_v32  ;;  %v786_v38 = vld [vmem:[#allocation3 + $0x90] sm:$0xf] }
 0x2a9   :  { %1708 = vmatprep.subr.msk.mxu1 %vm68_vm0, %v787_v14 }
 0x2aa   :  { %1709 = vmatpush1.msk.msra.mxu1 %vm68_vm0, %v786_v38 }
 0x2ab   :  { %1710 = vmatmul.mubr.msk.f32.vlgmr.msra.gmra.mrb[0].mxu1 %vm793_vm8, %v767_v37  ;;  %vm1028_vm8 = vcmask 277640  }
 0x2ac   :  { %1673 = vmatprep.mubr.f32.mxu1 %v2831_v32  ;;  %1029 = vst.msk [vmem:[#allocation4 + $0x20] sm:$0xff] %vm1028_vm8, %v2831_v32  ;;  %v2832_v32 = vld [vmem:[#allocation13_spill] sm:$0xff] }
 0x2b0   :  { %v791_v57 = vpop.permute.xlu1 %790 }
 0x37a   :  { %v875_v0 = vpop.f32.mrb[0].mxu0 }
 0x37b   :  { %v876_v62 = vadd.f32 %v875_v0, %v791_v57  ;;  %v877_v34 = vpop.f32.mrb[1].mxu0 }
 0x37c   :  { %v878_v22 = vadd.f32 %v877_v34, %v791_v57 }
 0x37d   :  { %v958_v10 = vmul.f32 %v876_v62, %v876_v62 }
 0x37e   :  { %v959_v46 = vmul.f32 %v878_v22, %v878_v22  ;;  %v946_v63 = vpop.f32.mrb[0].mxu1  ;;  %v953_v8 = vadd.f32 %v878_v22, %v876_v62 }
 0x37f   :  { %v947_v44 = vadd.f32 %v946_v63, %v791_v57  ;;  %v948_v36 = vpop.f32.mrb[1].mxu1 }
 0x380   :  { %v949_v42 = vadd.f32 %v948_v36, %v791_v57  ;;  %v962_v5 = vadd.f32 %v959_v46, %v958_v10  ;;  %v2835_v36 = vld [vmem:[#allocation12_spill] sm:$0xff] }
 0x381   :  { %v960_v52 = vmul.f32 %v947_v44, %v947_v44  ;;  %v954_v19 = vadd.f32 %v953_v8, %v947_v44  ;;  %v2833_v8 = vld [vmem:[#allocation15_spill] sm:$0xff] }
 0x382   :  { %v961_v15 = vmul.f32 %v949_v42, %v949_v42 }
 0x383   :  { %v955_v56 = vadd.f32 %v954_v19, %v949_v42  ;;  %v963_v28 = vadd.f32 %v962_v5, %v960_v52  ;;  %v2837_v52 = vld [vmem:[#allocation16_spill] sm:$0xff] }
 0x385   :  { %956 = vadd.xlane.f32.xlu0 %v955_v56  ;;  %v964_v11 = vadd.f32 %v963_v28, %v961_v15 }
 0x387   :  { %965 = vadd.xlane.f32.xlu1 %v964_v11 }
 0x412   :  { %v957_v35 = vpop.xlane.xlu0 %956 }
 0x413   :  { %v967_v39 = vmul.f32 0.001953125, %v957_v35 }
 0x414   :  { %v966_v16 = vpop.xlane.xlu1 %965 }
 0x415   :  { %v969_v55 = vmul.f32 %v967_v39, %v967_v39  ;;  %v968_v45 = vmul.f32 0.001953125, %v966_v16 }
 0x417   :  { %v970_v7 = vsub.f32 %v968_v45, %v969_v55 }
 0x419   :  { %v971_v27 = vadd.f32 1e-05, %v970_v7 }
 0x41b   :  { %1867 = vrsqrt.f32 %v971_v27 }
 0x425   :  { %v1868_v31 = vpop.eup %1867 }
 0x426   :  { %v973_v2 = vmul.f32 %v1868_v31, %v951_v1 }
 0x428   :  { %978 = vperm.xlu0 %1788, %v973_v2   ;;  %v974_v30 = vmul.f32 %v973_v2, %v967_v39 }
 0x42a   :  { %v975_v49 = vsub.f32 %v952_v43, %v974_v30 }
 0x42c   :  { %987 = vperm.xlu1 %1787, %v975_v49   ;;  %1075 = vrot.lane.b32.xlu0 %v2060_v41, %s1929_s2 }
 0x430   :  { %1079 = vrot.lane.b32.xlu0 %v2073_v48, %s1929_s2  ;;  %1073 = vrot.lane.b32.xlu1 %v2057_v40, %s1929_s2 }
 0x434   :  { %1128 = vrot.lane.b32.xlu0 %v2118_v4, %s1930_s3  ;;  %1077 = vrot.lane.b32.xlu1 %v2070_v47, %s1929_s2 }
 0x438   :  { %1132 = vrot.lane.b32.xlu0 %v2089_v54, %s1930_s3  ;;  %1126 = vrot.lane.b32.xlu1 %v2115_v3, %s1930_s3 }
 0x43c   :  { %1181 = vrot.lane.b32.xlu0 %v2080_v51, %s1931_s13  ;;  %1130 = vrot.lane.b32.xlu1 %v2086_v53, %s1930_s3 }
 0x440   :  { %1185 = vrot.lane.b32.xlu0 %v2101_v59, %s1931_s13  ;;  %1179 = vrot.lane.b32.xlu1 %v2077_v50, %s1931_s13 }
 0x444   :  { %1234 = vrot.lane.b32.xlu0 %v2168_v21, %s1934_s16  ;;  %1183 = vrot.lane.b32.xlu1 %v2097_v58, %s1931_s13 }
 0x448   :  { %1238 = vrot.lane.b32.xlu0 %v2180_v25, %s1934_s16  ;;  %1232 = vrot.lane.b32.xlu1 %v2165_v20, %s1934_s16 }
 0x44c   :  { %1287 = vrot.lane.b32.xlu0 %v2145_v13, %s1932_s14  ;;  %1236 = vrot.lane.b32.xlu1 %v2177_v24, %s1934_s16 }
 0x450   :  { %1291 = vrot.lane.b32.xlu0 %v2108_v61, %s1932_s14  ;;  %1285 = vrot.lane.b32.xlu1 %v2142_v12, %s1932_s14 }
 0x454   :  { %1340 = vrot.lane.b32.xlu0 %v2134_v9, %s1927_s24 }
 0x458   :  { %1344 = vrot.lane.b32.xlu0 %v2174_v23, %s1927_s24 }
 0x45c   :  { %1393 = vrot.lane.b32.xlu0 %v2157_v17, %s1933_s15 }
 0x460   :  { %1397 = vrot.lane.b32.xlu0 %v2124_v6, %s1933_s15 }
 0x464   :  { %1446 = vrot.lane.b32.xlu0 %v2208_v29, %s1937_s17 }
 0x468   :  { %1450 = vrot.lane.b32.xlu0 %v2204_v26, %s1937_s17 }
 0x4a7   :  { %v979_v40 = vpop.permute.xlu0 %978 }
 0x4a8   :  { %v981_v41 = vmul.f32 %v979_v40, %v876_v62  ;;  %v982_v47 = vmul.f32 %v979_v40, %v878_v22  ;;  %v983_v48 = vmul.f32 %v979_v40, %v947_v44  ;;  %v984_v50 = vmul.f32 %v979_v40, %v949_v42  ;;  %v2834_v44 = vld [vmem:[#allocation14_spill] sm:$0xff]  ;;  %v2836_v42 = vld [vmem:[#allocation17_spill] sm:$0xff] }
 0x4ab   :  { %v988_v51 = vpop.permute.xlu1 %987  ;;  %v1076_v15 = vpop.permute.xlu0 %1075 }
 0x4ac   :  { %v990_v53 = vadd.f32 %v988_v51, %v981_v41  ;;  %v991_v54 = vadd.f32 %v988_v51, %v982_v47  ;;  %v992_v58 = vadd.f32 %v988_v51, %v983_v48  ;;  %v993_v59 = vadd.f32 %v988_v51, %v984_v50 }
 0x4ae   :  { %v998_v61 = vmin.f32 %v990_v53, 0.0  ;;  %v999_v3 = vmin.f32 %v991_v54, 0.0  ;;  %v1000_v4 = vmin.f32 %v992_v58, 0.0  ;;  %v1001_v6 = vmin.f32 %v993_v59, 0.0 }
 0x4af   :  { %vm994_vm0 = vcmp.gt.f32.partialorder %v990_v53, 0.0  ;;  %vm995_vm4 = vcmp.gt.f32.partialorder %v991_v54, 0.0  ;;  %vm996_vm7 = vcmp.gt.f32.partialorder %v992_v58, 0.0  ;;  %vm997_vm6 = vcmp.gt.f32.partialorder %v993_v59, 0.0  ;;  %v2565_v19 = vpop.permute.xlu1 %1073  ;;  %v1080_v28 = vpop.permute.xlu0 %1079 }
 0x4b0   :  { %v1002_v9 = vmul.f32 1.442695, %v998_v61  ;;  %v1004_v12 = vmul.f32 1.442695, %v999_v3  ;;  %v1006_v13 = vmul.f32 1.442695, %v1000_v4 }
 0x4b1   :  { %v1008_v17 = vmul.f32 1.442695, %v1001_v6 }
 0x4b2   :  { %1869 = vpow2.f32 %v1002_v9 }
 0x4b3   :  { %1871 = vpow2.f32 %v1004_v12  ;;  %v1129_v35 = vpop.permute.xlu0 %1128 }
 0x4b4   :  { %1873 = vpow2.f32 %v1006_v13 }
 0x4b5   :  { %1875 = vpow2.f32 %v1008_v17 }
 0x4b7   :  { %v2571_v16 = vpop.permute.xlu0 %1132 }
 0x4bb   :  { %v1182_v45 = vpop.permute.xlu0 %1181 }
 0x4bc   :  { %v1870_v20 = vpop.eup %1869 }
 0x4bd   :  { %v1872_v21 = vpop.eup %1871  ;;  %v1711_v23 = vadd.f32 -1.0, %v1870_v20 }
 0x4be   :  { %v1874_v24 = vpop.eup %1873  ;;  %v1712_v25 = vadd.f32 -1.0, %v1872_v21 }
 0x4bf   :  { %v1014_v26 = vmul.f32 1.6732632, %v1711_v23  ;;  %v1713_v29 = vadd.f32 -1.0, %v1874_v24  ;;  %v1876_v18 = vpop.eup %1875  ;;  %v2577_v27 = vpop.permute.xlu0 %1185 }
 0x4c0   :  { %v1015_v33 = vmul.f32 1.6732632, %v1712_v25  ;;  %v1714_v0 = vadd.f32 -1.0, %v1876_v18 }
 0x4c1   :  { %v1018_v37 = vsel %vm994_vm0, %v990_v53, %v1014_v26  ;;  %v1016_v57 = vmul.f32 1.6732632, %v1713_v29 }
 0x4c2   :  { %v1022_v14 = vmul.f32 1.050701, %v1018_v37  ;;  %v1019_v38 = vsel %vm995_vm4, %v991_v54, %v1015_v33  ;;  %v1017_v22 = vmul.f32 1.6732632, %v1714_v0  ;;  %vm1050_vm4 = vcmask 1047688  }
 0x4c3   :  { %v1023_v62 = vmul.f32 1.050701, %v1019_v38  ;;  %v1020_v34 = vsel %vm996_vm7, %v992_v58, %v1016_v57  ;;  %v1235_v31 = vpop.permute.xlu0 %1234 }
 0x4c4   :  { %1034 = vrot.lane.b32.xlu1 %v1022_v14, %s1934_s16  ;;  %v1024_v10 = vmul.f32 1.050701, %v1020_v34  ;;  %v1021_v46 = vsel %vm997_vm6, %v993_v59, %v1017_v22  ;;  %v1081_v22 = vsel %vm243_vm12, %v2565_v19, %v1076_v15 }
 0x4c5   :  { %v1025_v63 = vmul.f32 1.050701, %v1021_v46 }
 0x4c7   :  { %v2581_v30 = vpop.permute.xlu0 %1238 }
 0x4c8   :  { %1036 = vrot.lane.b32.xlu1 %v1023_v62, %s1934_s16 }
 0x4cb   :  { %v1288_v51 = vpop.permute.xlu0 %1287 }
 0x4cc   :  { %1038 = vrot.lane.b32.xlu1 %v1024_v10, %s1934_s16 }
 0x4cf   :  { %v2607_v3 = vpop.permute.xlu0 %1291 }
 0x4d0   :  { %1040 = vrot.lane.b32.xlu1 %v1025_v63, %s1934_s16 }
 0x4d3   :  { %v1341_v20 = vpop.permute.xlu0 %1340 }
 0x4d4   :  { %1289 = vrot.lane.b32.xlu1 %v2105_v60, %s1932_s14  ;;  %v1078_v60 = vpop.permute.xlu1 %1077 }
 0x4d5   :  { %v1083_v13 = vsel %vm243_vm12, %v1078_v60, %v1080_v28  ;;  %v1082_v33 = vsel %vm243_vm12, %v1076_v15, %v1078_v60  ;;  %vm2846_vm12 = vcmask 785408  }
 0x4d6   :  { %vm2854_vm7 = vmmov %vm2846_vm12 }
 0x4d7   :  { %v2630_v38 = vpop.permute.xlu0 %1344  ;;  %vm2856_vm8 = vmmov %vm2854_vm7 }
 0x4d8   :  { %1338 = vrot.lane.b32.xlu1 %v2832_v32, %s1927_s24  ;;  %v1127_v5 = vpop.permute.xlu1 %1126 }
 0x4d9   :  { %v1134_v29 = vsel %vm313_vm9, %v1127_v5, %v1129_v35 }
 0x4dc   :  { %1342 = vrot.lane.b32.xlu1 %v2833_v8, %s1927_s24  ;;  %v2567_v56 = vpop.permute.xlu1 %1130 }
 0x4dd   :  { %v1135_v23 = vsel %vm313_vm9, %v1129_v35, %v2567_v56 }
 0x4e0   :  { %1391 = vrot.lane.b32.xlu1 %v2834_v44, %s1933_s15  ;;  %v1180_v11 = vpop.permute.xlu1 %1179 }
 0x4e1   :  { %v1187_v10 = vsel %vm382_vm13, %v1180_v11, %v1182_v45 }
 0x4e4   :  { %1395 = vrot.lane.b32.xlu1 %v2835_v36, %s1933_s15  ;;  %v2569_v39 = vpop.permute.xlu1 %1183 }
 0x4e5   :  { %v1188_v37 = vsel %vm382_vm13, %v1182_v45, %v2569_v39 }
 0x4e8   :  { %1444 = vrot.lane.b32.xlu1 %v2836_v42, %s1937_s17  ;;  %v2573_v55 = vpop.permute.xlu1 %1232 }
 0x4ec   :  { %1448 = vrot.lane.b32.xlu1 %v2837_v52, %s1937_s17  ;;  %v2575_v7 = vpop.permute.xlu1 %1236  ;;  %v1136_v52 = vsel %vm313_vm9, %v2567_v56, %v2571_v16 }
 0x4ed   :  { %v1241_v32 = vsel %vm161_vm2, %v1235_v31, %v2575_v7 }
 0x4f0   :  { %v2579_v1 = vpop.permute.xlu1 %1285 }
 0x536   :  { %v1035_v2 = vpop.permute.xlu1 %1034 }
 0x537   :  { %1051 = vst.msk [vmem:[#allocation4] sm:$0xff] %vm1050_vm4, %v1035_v2 }
 0x53a   :  { %v1037_v43 = vpop.permute.xlu1 %1036 }
 0x53b   :  { %v2584_v49 = vsel %vm161_vm2, %v1035_v2, %v1037_v43 }
 0x53c   :  { %v1143_v18 = vmul.f32 %v1134_v29, %v2584_v49  ;;  %v1196_v46 = vmul.f32 %v1187_v10, %v2584_v49  ;;  %v1090_v63 = vmul.f32 %v1081_v22, %v2584_v49 }
 0x53e   :  { %v1039_v40 = vpop.permute.xlu1 %1038  ;;  %v2586_v41 = vld [vmem:[#allocation4] sm:$0xff] }
 0x53f   :  { %v2589_v47 = vsel %vm161_vm2, %v1037_v43, %v1039_v40  ;;  %v1142_v48 = vmul.f32 %v1127_v5, %v2586_v41  ;;  %v1089_v50 = vmul.f32 %v2586_v41, %v2565_v19  ;;  %v1248_v58 = vmul.f32 %v2573_v55, %v2586_v41  ;;  %v1394_v5 = vpop.permute.xlu0 %1393 }
 0x540   :  { %v1195_v59 = vmul.f32 %v1180_v11, %v2586_v41  ;;  %v1301_v4 = vmul.f32 %v2579_v1, %v2586_v41  ;;  %v1144_v26 = vmul.f32 %v1135_v23, %v2589_v47  ;;  %v1197_v62 = vmul.f32 %v1188_v37, %v2589_v47 }
 0x541   :  { %1152 = vrot.lane.b32.xlu0 %v1142_v48, %s1938_s18  ;;  %1099 = vrot.lane.b32.xlu1 %v1089_v50, %s1943_s23  ;;  %v1091_v34 = vmul.f32 %v1082_v33, %v2589_v47  ;;  %v1250_v36 = vmul.f32 %v1241_v32, %v2589_v47  ;;  %v1240_v19 = vsel %vm161_vm2, %v2573_v55, %v1235_v31 }
 0x542   :  { %v1041_v53 = vpop.permute.xlu1 %1040  ;;  %v1799_v0 = vpack.i.bf16 %v1144_v26, %v1143_v18  ;;  %v1809_v8 = vpack.i.bf16 %v1197_v62, %v1196_v46  ;;  %v1249_v15 = vmul.f32 %v1240_v19, %v2584_v49  ;;  %v1293_v55 = vsel %vm520_vm10, %v2579_v1, %v1288_v51 }
 0x543   :  { %v2597_v54 = vsel %vm161_vm2, %v1039_v40, %v1041_v53  ;;  %1055 = vst.msk [vmem:[#allocation4 + $0x20] sm:$0xff] %vm161_vm2, %v1041_v53  ;;  %v1789_v44 = vpack.i.bf16 %v1091_v34, %v1090_v63  ;;  %v1302_v2 = vmul.f32 %v1293_v55, %v2584_v49  ;;  %v1398_v50 = vpop.permute.xlu0 %1397 }
 0x544   :  { %v1092_v21 = vmul.f32 %v1083_v13, %v2597_v54  ;;  %v1819_v35 = vpack.i.bf16 %v1250_v36, %v1249_v15 }
 0x545   :  { %1258 = vrot.lane.b32.xlu0 %v1248_v58, %s1939_s19  ;;  %1205 = vrot.lane.b32.xlu1 %v1195_v59, %s1944_s25 }
 0x546   :  { %v2605_v61 = vpop.permute.xlu1 %1289 }
 0x547   :  { %v1294_v60 = vsel %vm520_vm10, %v1288_v51, %v2605_v61  ;;  %v1242_v51 = vsel %vm161_vm2, %v2575_v7, %v2581_v30  ;;  %v1447_v23 = vpop.permute.xlu0 %1446  ;;  %vm2842_vm2 = vcmask 908288  }
 0x548   :  { %v1303_v11 = vmul.f32 %v1294_v60, %v2589_v47  ;;  %vm2843_vm9 = vmmov %vm2842_vm2 }
 0x549   :  { %1311 = vrot.lane.b32.xlu1 %v1301_v4, %s1940_s20  ;;  %v1251_v4 = vmul.f32 %v1242_v51, %v2597_v54  ;;  %v2840_v51 = vld [vmem:[#allocation18_spill] sm:$0xff] }
 0x54a   :  { %v2612_v6 = vld [vmem:[#allocation4 + $0x20] sm:$0xff]  ;;  %v1339_v9 = vpop.permute.xlu1 %1338  ;;  %v1829_v53 = vpack.i.bf16 %v1303_v11, %v1302_v2 }
 0x54b   :  { %v1354_v12 = vmul.f32 %v1339_v9, %v2586_v41  ;;  %v1093_v17 = vmul.f32 %v2612_v6, %v1080_v28  ;;  %v1146_v42 = vmul.f32 %v2612_v6, %v2571_v16  ;;  %v1145_v28 = vmul.f32 %v1136_v52, %v2597_v54 }
 0x54c   :  { %v1199_v56 = vmul.f32 %v2612_v6, %v2577_v27  ;;  %v1189_v16 = vsel %vm382_vm13, %v2569_v39, %v2577_v27  ;;  %v1346_v48 = vsel %vm590_vm14, %v1339_v9, %v1341_v20  ;;  %v1252_v1 = vmul.f32 %v2612_v6, %v2581_v30  ;;  %vm2847_vm13 = vmmov %vm2842_vm2 }
 0x54d   :  { %1364 = vrot.lane.b32.xlu0 %v1354_v12, %s1941_s21  ;;  %v1794_v25 = vpack.i.bf16 %v1093_v17, %v1092_v21  ;;  %v1804_v45 = vpack.i.bf16 %v1146_v42, %v1145_v28  ;;  %v1198_v40 = vmul.f32 %v1189_v16, %v2597_v54  ;;  %v1355_v59 = vmul.f32 %v1346_v48, %v2584_v49 }
 0x54e   :  { %v2621_v24 = vpop.permute.xlu1 %1342  ;;  %v1295_v9 = vsel %vm520_vm10, %v2605_v61, %v2607_v3  ;;  %v1305_v13 = vmul.f32 %v2607_v3, %v2612_v6  ;;  %v1411_v22 = vmul.f32 %v1398_v50, %v2612_v6  ;;  %vm2844_vm10 = vcmask 900096  }
 0x54f   :  { %v1347_v31 = vsel %vm590_vm14, %v1341_v20, %v2621_v24  ;;  %v1814_v27 = vpack.i.bf16 %v1199_v56, %v1198_v40  ;;  %v1824_v20 = vpack.i.bf16 %v1252_v1, %v1251_v4  ;;  %v1348_v21 = vsel %vm590_vm14, %v2621_v24, %v2630_v38  ;;  %vm2848_vm14 = vmmov %vm2846_vm12 }
 0x550   :  { %v1356_v39 = vmul.f32 %v1347_v31, %v2589_v47  ;;  %v1357_v3 = vmul.f32 %v1348_v21, %v2597_v54  ;;  %v1358_v24 = vmul.f32 %v2630_v38, %v2612_v6 }
 0x551   :  { %1795 = vrot.lane.b32.xlu0 %v1794_v25, %s1943_s23  ;;  %v1304_v25 = vmul.f32 %v1295_v9, %v2597_v54 }
 0x552   :  { %v1392_v14 = vpop.permute.xlu1 %1391  ;;  %v1839_v7 = vpack.i.bf16 %v1356_v39, %v1355_v59 }
 0x553   :  { %v1407_v57 = vmul.f32 %v1392_v14, %v2586_v41  ;;  %v1399_v12 = vsel %vm659_vm11, %v1392_v14, %v1394_v5  ;;  %v1834_v61 = vpack.i.bf16 %v1305_v13, %v1304_v25  ;;  %v1451_v14 = vpop.permute.xlu0 %1450 }
 0x554   :  { %v1408_v26 = vmul.f32 %v1399_v12, %v2584_v49 }
 0x555   :  { %1800 = vrot.lane.b32.xlu0 %v1799_v0, %s1938_s18  ;;  %1417 = vrot.lane.b32.xlu1 %v1407_v57, %s1942_s22  ;;  %v1844_v57 = vpack.i.bf16 %v1358_v24, %v1357_v3 }
 0x556   :  { %v1396_v43 = vpop.permute.xlu1 %1395 }
 0x557   :  { %v1400_v58 = vsel %vm659_vm11, %v1394_v5, %v1396_v43  ;;  %v1401_v18 = vsel %vm659_vm11, %v1396_v43, %v1398_v50  ;;  %vm2845_vm11 = vmmov %vm2844_vm10 }
 0x558   :  { %v1409_v30 = vmul.f32 %v1400_v58, %v2589_v47  ;;  %v1410_v0 = vmul.f32 %v1401_v18, %v2597_v54  ;;  %v2841_v58 = vld [vmem:[#allocation20_spill] sm:$0xff] }
 0x559   :  { %1810 = vrot.lane.b32.xlu0 %v1809_v8, %s1944_s25  ;;  %1790 = vrot.lane.b32.xlu1 %v1789_v44, %s1943_s23  ;;  %v1464_v8 = vmul.f32 %v1451_v14, %v2612_v6  ;;  %v1026_v44 = vld [vmem:[%s2794_s9] sm:$0xff]  ;;  %v1061_v59 = vmul.f32 %v2584_v49, %v2841_v58 }
 0x55a   :  { %v1445_v17 = vpop.permute.xlu1 %1444  ;;  %v1849_v29 = vpack.i.bf16 %v1409_v30, %v1408_v26  ;;  %v1854_v38 = vpack.i.bf16 %v1411_v22, %v1410_v0 }
 0x55b   :  { %v1452_v33 = vsel %vm729_vm15, %v1445_v17, %v1447_v23  ;;  %v1460_v63 = vmul.f32 %v1445_v17, %v2586_v41 }
 0x55c   :  { %v1461_v62 = vmul.f32 %v1452_v33, %v2584_v49 }
 0x55d   :  { %1820 = vrot.lane.b32.xlu0 %v1819_v35, %s1939_s19  ;;  %1805 = vrot.lane.b32.xlu1 %v1804_v45, %s1938_s18  ;;  %v2838_v35 = vld [vmem:[#allocation19_spill] sm:$0xff] }
 0x55e   :  { %v1449_v37 = vpop.permute.xlu1 %1448  ;;  %v1063_v6 = vmul.f32 %v2597_v54, %v2838_v35 }
 0x55f   :  { %v1454_v34 = vsel %vm729_vm15, %v1449_v37, %v1451_v14  ;;  %v1453_v46 = vsel %vm729_vm15, %v1447_v23, %v1449_v37  ;;  %vm2849_vm15 = vmmov %vm2842_vm2 }
 0x560   :  { %v1463_v10 = vmul.f32 %v1454_v34, %v2597_v54  ;;  %v1462_v32 = vmul.f32 %v1453_v46, %v2589_v47  ;;  %v1062_v54 = vmul.f32 %v2589_v47, %v2840_v51 }
 0x561   :  { %1830 = vrot.lane.b32.xlu0 %v1829_v53, %s1940_s20  ;;  %1815 = vrot.lane.b32.xlu1 %v1814_v27, %s1944_s25  ;;  %v2839_v27 = vld [vmem:[#allocation21_spill] sm:$0xff] }
 0x562   :  { %v1060_v1 = vmul.f32 %v2586_v41, %v2839_v27 }
 0x565   :  { %1840 = vrot.lane.b32.xlu0 %v1839_v7, %s1941_s21  ;;  %1825 = vrot.lane.b32.xlu1 %v1824_v20, %s1939_s19 }
 0x569   :  { %1835 = vrot.lane.b32.xlu1 %v1834_v61, %s1940_s20  ;;  %1850 = vrot.lane.b32.xlu0 %v1849_v29, %s1942_s22 }
 0x56d   :  { %1845 = vrot.lane.b32.xlu1 %v1844_v57, %s1941_s21  ;;  %1472 = vrot.lane.b32.xlu0 %v1461_v62, %s1945_s26 }
 0x571   :  { %1855 = vrot.lane.b32.xlu1 %v1854_v38, %s1942_s22  ;;  %1476 = vrot.lane.b32.xlu0 %v1463_v10, %s1945_s26 }
 0x575   :  { %1470 = vrot.lane.b32.xlu0 %v1460_v63, %s1945_s26  ;;  %1474 = vrot.lane.b32.xlu1 %v1462_v32, %s1945_s26 }
 0x579   :  { %1478 = vrot.lane.b32.xlu1 %v1464_v8, %s1945_s26 }
 0x57d   :  { %1531 = vperm.xlu1 %1787, %v1026_v44  }
 0x5b3   :  { %v1153_v36 = vpop.permute.xlu0 %1152  ;;  %v1100_v42 = vpop.permute.xlu1 %1099 }
 0x5b7   :  { %v1259_v52 = vpop.permute.xlu0 %1258  ;;  %v1206_v19 = vpop.permute.xlu1 %1205 }
 0x5bb   :  { %v1312_v5 = vpop.permute.xlu1 %1311 }
 0x5bf   :  { %v2724_v60 = vpop.permute.xlu0 %1364 }
 0x5c3   :  { %v1796_v15 = vpop.permute.xlu0 %1795 }
 0x5c4   :  { %v1798_v28 = vunpack.i.h.bf16 %v1796_v15  ;;  %v1797_v11 = vunpack.i.l.bf16 %v1796_v15 }
 0x5c6   :  { %v1112_v45 = vsel %vm269_vm1, %v1797_v11, %v1798_v28 }
 0x5c7   :  { %v1801_v56 = vpop.permute.xlu0 %1800  ;;  %v2729_v16 = vpop.permute.xlu1 %1417  ;;  %v1749_v55 = vpack.c.bf16 %v1112_v45, %v1063_v6 }
 0x5c8   :  { %v1803_v31 = vunpack.i.h.bf16 %v1801_v56  ;;  %v1802_v40 = vunpack.i.l.bf16 %v1801_v56 }
 0x5c9   :  { %1750 = vmatprep.subr.bf16.mxu1 %v1749_v55 }
 0x5ca   :  { %v1163_v23 = vsel %vm338_vm5, %v1802_v40, %v1803_v31  ;;  %v1162_v61 = vsel %vm338_vm5, %v1153_v36, %v1802_v40 }
 0x5cb   :  { %v1811_v2 = vpop.permute.xlu0 %1810  ;;  %v1791_v43 = vpop.permute.xlu1 %1790 }
 0x5cc   :  { %v1812_v48 = vunpack.i.l.bf16 %v1811_v2  ;;  %v1793_v50 = vunpack.i.h.bf16 %v1791_v43  ;;  %v1792_v53 = vunpack.i.l.bf16 %v1791_v43  ;;  %v1813_v39 = vunpack.i.h.bf16 %v1811_v2 }
 0x5ce   :  { %v1111_v4 = vsel %vm269_vm1, %v1793_v50, %v1797_v11  ;;  %v1109_v9 = vsel %vm269_vm1, %v1100_v42, %v1792_v53  ;;  %v1110_v12 = vsel %vm269_vm1, %v1792_v53, %v1793_v50  ;;  %v1215_v21 = vsel %vm408_vm3, %v1206_v19, %v1812_v48 }
 0x5cf   :  { %v1751_v13 = vpack.c.bf16 %v1111_v4, %v1062_v54  ;;  %v1735_v7 = vpack.c.bf16 %v1109_v9, %v1060_v1  ;;  %v1821_v30 = vpop.permute.xlu0 %1820  ;;  %v1806_v17 = vpop.permute.xlu1 %1805  ;;  %v1733_v20 = vpack.c.bf16 %v1110_v12, %v1061_v59  ;;  %v1216_v49 = vsel %vm408_vm3, %v1812_v48, %v1813_v39 }
 0x5d0   :  { %v1823_v41 = vunpack.i.h.bf16 %v1821_v30  ;;  %v1822_v47 = vunpack.i.l.bf16 %v1821_v30  ;;  %v1808_v25 = vunpack.i.h.bf16 %v1806_v17  ;;  %v1807_v26 = vunpack.i.l.bf16 %v1806_v17 }
 0x5d1   :  { %1734 = vmatprep.subr.bf16.mxu0 %v1733_v20  ;;  %1752 = vmatpush1.bf16.msra.mxu1 %v1751_v13  ;;  %v1737_v3 = vpack.c.bf16 %v1216_v49, %v1163_v23  ;;  %v1739_v29 = vpack.c.bf16 %v1215_v21, %v1162_v61  ;;  %vm2850_vm1 = vcmask 777216   ;;  %v1492_v49 = vld [vmem:[%s2793_s8] sm:$0xff]  ;;  %s1946_s8 = smov [#allocation9]  }
 0x5d2   :  { %1736 = vmatpush1.bf16.msra.mxu0 %v1735_v7  ;;  %v1268_v0 = vsel %vm2842_vm2, %v1259_v52, %v1822_v47  ;;  %v1164_v62 = vsel %vm338_vm5, %v1803_v31, %v1807_v26  ;;  %v1269_v34 = vsel %vm2843_vm9, %v1822_v47, %v1823_v41  ;;  %v1165_v22 = vsel %vm338_vm5, %v1807_v26, %v1808_v25  ;;  %vm2852_vm5 = vmmov %vm2850_vm1  ;;  %s1690_s11 = sshll.u32 %s1946_s8, 4  ;;  %s1691_s11 = int_to_ptr.vmem [resolvable:$true] %s1690_s11 }
 0x5d3   :  { %v1831_v18 = vpop.permute.xlu0 %1830  ;;  %v1816_v33 = vpop.permute.xlu1 %1815  ;;  %1738 = vmatprep.subr.bf16.mxu0 %v1737_v3  ;;  %vm2855_vm0 = vmmov %vm2850_vm1  ;;  %vm2858_vm2 = vcmask 769024   ;;  %s1899_s12 = scalar_lea.vmem %s1691_s11, 512  ;;  %p1904_p9 = scmp.lt.s32.totalorder %s1691_s11, %s1691_s11 }
 0x5d4   :  { %v1833_v24 = vunpack.i.h.bf16 %v1831_v18  ;;  %v1832_v37 = vunpack.i.l.bf16 %v1831_v18  ;;  %v1818_v14 = vunpack.i.h.bf16 %v1816_v33  ;;  %v1817_v57 = vunpack.i.l.bf16 %v1816_v33  ;;  %vm2857_vm4 = vmmov %vm2855_vm0  ;;  %p1900_p8 = scmp.ne.s32.totalorder %s1691_s11, %s1899_s12  ;;  %p1905_p10 = scmp.lt.s32.totalorder %s1899_s12, %s1899_s12 }
 0x5d5   :  { %vm2859_vm9 = vmmov %vm2858_vm2 }
 0x5d6   :  { %v1321_v38 = vsel %vm2844_vm10, %v1312_v5, %v1832_v37  ;;  %v1217_v10 = vsel %vm408_vm3, %v1813_v39, %v1817_v57  ;;  %1740 = vmatpush1.bf16.msra.mxu0 %v1739_v29  ;;  %v1322_v46 = vsel %vm2845_vm11, %v1832_v37, %v1833_v24  ;;  %v1218_v63 = vsel %vm408_vm3, %v1817_v57, %v1818_v14  ;;  %vm2851_vm3 = vmmov %vm2844_vm10  ;;  %p1906_p11 = por %p1905_p10, %p1904_p9 }
 0x5d7   :  { %v1743_v32 = vpack.c.bf16 %v1321_v38, %v1268_v0  ;;  %v1755_v8 = vpack.c.bf16 %v1217_v10, %v1164_v62  ;;  %v1841_v44 = vpop.permute.xlu0 %1840  ;;  %v1826_v36 = vpop.permute.xlu1 %1825  ;;  %v1741_v42 = vpack.c.bf16 %v1322_v46, %v1269_v34  ;;  %v1753_v52 = vpack.c.bf16 %v1218_v63, %v1165_v22  ;;  %vm2853_vm6 = vmmov %vm2851_vm3 }
 0x5d8   :  { %v1843_v19 = vunpack.i.h.bf16 %v1841_v44  ;;  %v1842_v15 = vunpack.i.l.bf16 %v1841_v44  ;;  %v1828_v28 = vunpack.i.h.bf16 %v1826_v36  ;;  %v1827_v11 = vunpack.i.l.bf16 %v1826_v36  ;;  %vm2860_vm11 = vmmov %vm2858_vm2  ;;  %p1907_p12 = pnand %p1906_p11, %p1900_p8 }
 0x5d9   :  { %1742 = vmatprep.subr.bf16.mxu0 %v1741_v42  ;;  %1754 = vmatprep.subr.bf16.mxu1 %v1753_v52  ;;  %vm1534_vm10 = vcmask 588800  }
 0x5da   :  { %1744 = vmatpush1.bf16.msra.mxu0 %v1743_v32  ;;  %1756 = vmatpush1.bf16.msra.mxu1 %v1755_v8  ;;  %v1374_v31 = vsel %vm2846_vm12, %v2724_v60, %v1842_v15  ;;  %v1270_v2 = vsel %vm2847_vm13, %v1823_v41, %v1827_v11  ;;  %v1375_v43 = vsel %vm2848_vm14, %v1842_v15, %v1843_v19  ;;  %vm2861_vm12 = vmmov %vm2858_vm2 }
 0x5db   :  { %v1851_v5 = vpop.permute.xlu0 %1850  ;;  %v1836_v35 = vpop.permute.xlu1 %1835  ;;  %v1271_v40 = vsel %vm2849_vm15, %v1827_v11, %v1828_v28 }
 0x5dc   :  { %v1853_v6 = vunpack.i.h.bf16 %v1851_v5  ;;  %v1852_v45 = vunpack.i.l.bf16 %v1851_v5  ;;  %v1838_v56 = vunpack.i.h.bf16 %v1836_v35  ;;  %v1837_v55 = vunpack.i.l.bf16 %v1836_v35 }
 0x5de   :  { %v1427_v48 = vsel %vm2850_vm1, %v2729_v16, %v1852_v45  ;;  %v1323_v50 = vsel %vm2851_vm3, %v1833_v24, %v1837_v55  ;;  %v1428_v53 = vsel %vm2852_vm5, %v1852_v45, %v1853_v6  ;;  %v1324_v39 = vsel %vm2853_vm6, %v1837_v55, %v1838_v56 }
 0x5df   :  { %v1747_v27 = vpack.c.bf16 %v1427_v48, %v1374_v31  ;;  %v1759_v1 = vpack.c.bf16 %v1323_v50, %v1270_v2  ;;  %v1473_v51 = vpop.permute.xlu0 %1472  ;;  %v1846_v54 = vpop.permute.xlu1 %1845  ;;  %v1745_v60 = vpack.c.bf16 %v1428_v53, %v1375_v43  ;;  %v1757_v58 = vpack.c.bf16 %v1324_v39, %v1271_v40 }
 0x5e0   :  { %v1848_v59 = vunpack.i.h.bf16 %v1846_v54  ;;  %v1847_v4 = vunpack.i.l.bf16 %v1846_v54 }
 0x5e1   :  { %1746 = vmatprep.subr.bf16.mxu0 %v1745_v60  ;;  %1758 = vmatprep.subr.bf16.mxu1 %v1757_v58 }
 0x5e2   :  { %1748 = vmatpush1.bf16.msra.mxu0 %v1747_v27  ;;  %1760 = vmatpush1.bf16.msra.mxu1 %v1759_v1  ;;  %v1376_v7 = vsel %vm2854_vm7, %v1843_v19, %v1847_v4  ;;  %v1377_v17 = vsel %vm2856_vm8, %v1847_v4, %v1848_v59 }
 0x5e3   :  { %v1477_v9 = vpop.permute.xlu0 %1476  ;;  %v1856_v16 = vpop.permute.xlu1 %1855 }
 0x5e4   :  { %v1858_v12 = vunpack.i.h.bf16 %v1856_v16  ;;  %v1857_v13 = vunpack.i.l.bf16 %v1856_v16 }
 0x5e6   :  { %v1429_v30 = vsel %vm2855_vm0, %v1853_v6, %v1857_v13  ;;  %v1430_v20 = vsel %vm2857_vm4, %v1857_v13, %v1858_v12 }
 0x5e7   :  { %v1763_v21 = vpack.c.bf16 %v1429_v30, %v1376_v7  ;;  %v1471_v41 = vpop.permute.xlu0 %1470  ;;  %v1475_v23 = vpop.permute.xlu1 %1474  ;;  %v1761_v47 = vpack.c.bf16 %v1430_v20, %v1377_v17 }
 0x5e8   :  { %v1480_v25 = vsel %vm2858_vm2, %v1471_v41, %v1473_v51  ;;  %v1481_v26 = vsel %vm2859_vm9, %v1473_v51, %v1475_v23  ;;  %v1482_v29 = vsel %vm2861_vm12, %v1475_v23, %v1477_v9 }
 0x5e9   :  { %1554 = vmatprep.subr.mxu0 %v1481_v26  ;;  %1762 = vmatprep.subr.bf16.mxu1 %v1761_v47 }
 0x5ea   :  { %1555 = vmatpush1.msra.mxu0 %v1480_v25  ;;  %1764 = vmatpush1.bf16.msra.mxu1 %v1763_v21 }
 0x5eb   :  { %v1479_v61 = vpop.permute.xlu1 %1478  ;;  %1715 = vmatmul.mubr.msk.f32.vlgmr.msra.gmra.mrb[2].mxu0 %vm1534_vm10, %v1492_v49 }
 0x5ec   :  { %v1483_v3 = vsel %vm2860_vm11, %v1477_v9, %v1479_v61 }
 0x5ed   :  { %1625 = vmatprep.subr.mxu1 %v1483_v3 }
 0x5ee   :  { %1626 = vmatpush1.msra.mxu1 %v1482_v29 }
 0x5ef   :  { %1716 = vmatmul.mubr.msk.f32.vlgmr.msra.gmra.mrb[2].mxu1 %vm1534_vm10, %v1492_v49 }
 0x5fc   :  { %v1532_v18 = vpop.permute.xlu1 %1531 }
 0x6be   :  { %v1604_v33 = vpop.f32.mrb[2].mxu0 }
 0x6bf   :  { %v1605_v24 = vadd.f32 %v1604_v33, %v1532_v18  ;;  %v1606_v37 = vpop.f32.mrb[3].mxu0 }
 0x6c0   :  { %v1607_v14 = vadd.f32 %v1606_v37, %v1532_v18 }
 0x6c1   :  { %1680 = vst [vmem:[#allocation9] sm:$0xff] %v1605_v24 }
 0x6c2   :  { %1681 = vst [vmem:[#allocation9 + $0x8] sm:$0xff] %v1607_v14  ;;  %v1675_v57 = vpop.f32.mrb[2].mxu1 }
 0x6c3   :  { %v1676_v0 = vadd.f32 %v1675_v57, %v1532_v18  ;;  %v1677_v62 = vpop.f32.mrb[3].mxu1 }
 0x6c4   :  { %v1678_v34 = vadd.f32 %v1677_v62, %v1532_v18 }
 0x6c5   :  { %1682 = vst [vmem:[#allocation9 + $0x10] sm:$0xff] %v1676_v0 }
 0x6c6   :  { %1683 = vst [vmem:[#allocation9 + $0x18] sm:$0xff] %v1678_v34 }
 0x6c7   :  { %1910 = shalt.err (!%p1907_p12)
}
 0x6c8   :  { %s1911_s13 = scalar_lea.hbm %s2795_s10, 512 }
 0x6c9   :  { %p1912_p13 = scmp.ne.s32.totalorder %s2795_s10, %s1911_s13  ;;  %p1915_p0 = scmp.lt.u32.totalorder %s1911_s13, %s2795_s10 }
 0x6cb   :  { %p1917_p1 = pnand %p1915_p0, %p1912_p13 }
 0x6cd   :  { %1920 = shalt.err (!%p1917_p1)
}
 0x6ce   :  { %1693 = dma.vmem_to_hbm [thread:$0]  %s1691_s11, 512, %s2795_s10, [#allocation8]  }
 0x6cf   :  { %1923 = dma.done.wait [#allocation8], 512  }
 0x6d0   :  { %1924 = vsyncadd [#allocation8], 4294966784 }
 0x6d1   :  { %1697 = vsyncpa [#allocation7], 1 }
 0x6d2   :  { %1698 = vsyncpa [#allocation8], 1 }

</bundles_post_ra>
